<compile_context>
chip_gen: v7x
topology: tpu7x:2x2x1
jax: 0.10.0
libtpu: 0.0.40
codegen_flags: <defaults>
</compile_context>

<pallas_src>
import functools

import jax
import jax.numpy as jnp
from jax.experimental import pallas as pl
from jax.experimental.pallas import tpu as pltpu


def _mha_kernel(*refs, num_heads, dim_per_head, batch_tile, q_tile, seq_len,
                model_dim, eps, compute_dtype, with_attention):
    if with_attention:
        (q_ref, k_ref, v_ref, res_ref,
         wq_ref, bq_ref, wk_ref, bk_ref, wv_ref, bv_ref,
         wf_ref, bf_ref, gamma_ref, beta_ref,
         out_ref, attn_ref, acc_ref) = refs
    else:
        (q_ref, k_ref, v_ref, res_ref,
         wq_ref, bq_ref, wk_ref, bk_ref, wv_ref, bv_ref,
         wf_ref, bf_ref, gamma_ref, beta_ref,
         out_ref, acc_ref) = refs
        attn_ref = None

    BT, TQ, S, D, dph = batch_tile, q_tile, seq_len, model_dim, dim_per_head
    rows_q = BT * TQ
    rows_kv = BT * S
    h = pl.program_id(2)            # head axis = innermost reduction axis
    cd = compute_dtype

    # Lane-dense 2-D activation slabs (leading-dim collapse only, no lane movement).
    x_q = q_ref[...].reshape(rows_q, D)
    x_k = k_ref[...].reshape(rows_kv, D)
    x_v = v_ref[...].reshape(rows_kv, D)

    # ---- Per-head projections straight off the MXU. --------------------------------
    # Weights are blocked per head by the BlockSpec, so there is NO in-kernel head
    # split (no masked lane slices).  The softmax scale is pre-folded into wq/bq.
    q_h = jnp.dot(x_q.astype(cd), wq_ref[0],
                  preferred_element_type=jnp.float32) + bq_ref[0]      # [rows_q, dph]
    k_h = jnp.dot(x_k.astype(cd), wk_ref[0],
                  preferred_element_type=jnp.float32) + bk_ref[0]      # [rows_kv, dph]
    v_h = jnp.dot(x_v.astype(cd), wv_ref[0],
                  preferred_element_type=jnp.float32) + bv_ref[0]

    qh = q_h.reshape(BT, TQ, dph).astype(cd)
    kh = k_h.reshape(BT, S, dph).astype(cd)
    vh = v_h.reshape(BT, S, dph).astype(cd)

    # ---- Scaled-dot-product attention for this (batch tile, q tile, head). ----------
    scores = jnp.einsum("bqd,bkd->bqk", qh, kh,
                        preferred_element_type=jnp.float32)            # [BT, TQ, S] f32
    scores = scores - jnp.max(scores, axis=-1, keepdims=True)
    e = jnp.exp(scores)
    denom = jnp.sum(e, axis=-1, keepdims=True)
    attn = e * (1.0 / denom)        # exact divide: returned rows sum to 1

    # TODO(synk): nn.Dropout(p) on `attn` / on the output is identity at p=0.0 (module
    # default); p>0 would need pltpu.prng_seed / prng_random_bits in-kernel.
    ctx = jnp.einsum("bqk,bkd->bqd", attn.astype(cd), vh,
                     preferred_element_type=jnp.float32)               # [BT, TQ, dph]

    if attn_ref is not None:
        # Stored after the ctx matmul so its HBM writeback overlaps the accumulation.
        attn_ref[...] = attn.reshape(BT, 1, TQ, S).astype(attn_ref.dtype)

    # ---- Head merge folded into the final projection: out = sum_h ctx_h @ wf_h. -----
    # (Replaces the old width-dph masked column stores into a [rows, M] scratch.)
    @pl.when(h == 0)
    def _():
        acc_ref[...] = jnp.zeros_like(acc_ref)

    acc_ref[...] += jnp.dot(ctx.reshape(rows_q, dph).astype(cd), wf_ref[0],
                            preferred_element_type=jnp.float32)        # [rows_q, D]

    # ---- Finalize after the last head: bias + LayerNorm + ReLU + residual. ----------
    @pl.when(h == num_heads - 1)
    def _():
        out = acc_ref[...] + bf_ref[...]
        mean = jnp.mean(out, axis=-1, keepdims=True)
        var = jnp.mean((out - mean) ** 2, axis=-1, keepdims=True)
        out = (out - mean) * jax.lax.rsqrt(var + eps)
        out = out * gamma_ref[...] + beta_ref[...]
        out = jnp.maximum(out, 0.0)
        out_ref[...] = res_ref[...] + out.reshape(BT, TQ, D)


def _vmem_limit_bytes():
    """Generation-aware scoped-VMEM limit: ~3/4 of physical, capped at 96 MiB."""
    try:
        info_fn = getattr(pltpu, "get_tpu_info", None)
        if info_fn is not None:
            cap = int(info_fn().vmem_capacity_bytes)
            if cap > 0:
                return int(max(32 * 1024 * 1024, min(3 * cap // 4, 96 * 1024 * 1024)))
    except Exception:
        pass
    return 48 * 1024 * 1024     # safe on v5e/v6e (128 MiB) and v7x (64 MiB)


def multi_head_attention(query, key, value, params, *, num_heads,
                         compute_dtype=jnp.bfloat16, return_attention=True,
                         attn_dtype=jnp.float32, batch_tile=None, q_tile=None):
    """Fused MultiHeadAttention forward.  Returns (output, attention) like the PyTorch
    module, or just `output` when return_attention=False (skips the O(B*H*S^2) write)."""
    B, S, D = query.shape
    M = params["wq"].shape[1]
    assert M % num_heads == 0
    dph = M // num_heads
    # PyTorch quirk preserved exactly: scale = (key.size(-1) // num_heads) ** -0.5 with
    # key of shape [B*H, S, dph] (integer floor division).  Guard the divide-by-zero.
    if dph // num_heads == 0:
        raise ValueError(
            f"dim_per_head // num_heads == 0 (dph={dph}, heads={num_heads}); the "
            "reference PyTorch module would raise ZeroDivisionError here.")
    scale = float((dph // num_heads) ** (-0.5))

    vmem_limit = _vmem_limit_bytes()

    # ---- Tiling heuristics ------------------------------------------------------------
    if batch_tile is None:
        # Largest divisor of B with <=2048 K/V rows per step, keeping >=2 batch steps
        # when B allows so the "parallel" axes can shard across v7x's two TensorCores.
        batch_tile = 1
        for c in range(1, B + 1):
            if B % c == 0 and c * S <= 2048 and (B // c >= 2 or B == 1):
                batch_tile = c
    assert B % batch_tile == 0

    q_divs = [t for t in range(8, S + 1, 8) if S % t == 0] or [S]
    if q_tile is None:
        q_tile = S
        if B // batch_tile < 2:
            # Guarantee >=2 "parallel" grid steps (v7x megacore) by splitting queries.
            smaller = [t for t in q_divs if t <= S // 2]
            if smaller:
                q_tile = max(smaller)
        # Bound the per-step softmax footprint (~3 f32 [BT, TQ, S] temps) to ~1/4 VMEM.
        while 3 * batch_tile * q_tile * S * 4 > vmem_limit // 4:
            smaller = [t for t in q_divs if t < q_tile]
            if not smaller:
                break
            q_tile = max(smaller)
    assert S % q_tile == 0
    grid = (B // batch_tile, S // q_tile, num_heads)

    # ---- One-time host-side prep --------------------------------------------------------
    # Fold the softmax scale into the q projection, reshape weights/biases per head so the
    # BlockSpec hands the kernel lane-dense per-head tiles (no in-kernel head split/merge),
    # and cast matmul weights to compute_dtype (biases / LayerNorm params stay f32).
    wq = (params["wq"] * scale).reshape(D, num_heads, dph).transpose(1, 0, 2).astype(compute_dtype)
    wk = params["wk"].reshape(D, num_heads, dph).transpose(1, 0, 2).astype(compute_dtype)
    wv = params["wv"].reshape(D, num_heads, dph).transpose(1, 0, 2).astype(compute_dtype)
    wf = params["wf"].reshape(num_heads, dph, D).astype(compute_dtype)
    bq = (params["bq"] * scale).reshape(num_heads, 1, dph)
    bk = params["bk"].reshape(num_heads, 1, dph)
    bv = params["bv"].reshape(num_heads, 1, dph)
    bf, gamma, beta = params["bf"], params["gamma"], params["beta"]

    kernel = functools.partial(
        _mha_kernel,
        num_heads=num_heads, dim_per_head=dph, batch_tile=batch_tile, q_tile=q_tile,
        seq_len=S, model_dim=D, eps=1e-5, compute_dtype=compute_dtype,
        with_attention=return_attention)

    q_spec = pl.BlockSpec((batch_tile, q_tile, D), lambda b, t, h: (b, t, 0))
    kv_spec = pl.BlockSpec((batch_tile, S, D), lambda b, t, h: (b, 0, 0))
    w_spec = pl.BlockSpec((1, D, dph), lambda b, t, h: (h, 0, 0))
    b_spec = pl.BlockSpec((1, 1, dph), lambda b, t, h: (h, 0, 0))
    wf_spec = pl.BlockSpec((1, dph, D), lambda b, t, h: (h, 0, 0))
    vec_spec = pl.BlockSpec((1, D), lambda b, t, h: (0, 0))

    out_spec = pl.BlockSpec((batch_tile, q_tile, D), lambda b, t, h: (b, t, 0))
    out_shape = jax.ShapeDtypeStruct((B, S, D), jnp.float32)
    out_specs, out_shapes = out_spec, out_shape
    if return_attention:
        attn_spec = pl.BlockSpec((batch_tile, 1, q_tile, S), lambda b, t, h: (b, h, t, 0))
        out_specs = (out_spec, attn_spec)
        out_shapes = (out_shape, jax.ShapeDtypeStruct((B, num_heads, S, S), attn_dtype))

    result = pl.pallas_call(
        kernel,
        grid=grid,
        in_specs=[q_spec, kv_spec, kv_spec, q_spec,   # query, key, value, residual(=value)
                  w_spec, b_spec,                      # linear_q (scale pre-folded)
                  w_spec, b_spec,                      # linear_k
                  w_spec, b_spec,                      # linear_v
                  wf_spec, vec_spec,                   # linear_final
                  vec_spec, vec_spec],                 # layer_norm gamma, beta
        out_specs=out_specs,
        out_shape=out_shapes,
        scratch_shapes=[pltpu.VMEM((batch_tile * q_tile, D), jnp.float32)],  # head-sum acc
        compiler_params=pltpu.CompilerParams(
            dimension_semantics=("parallel", "parallel", "arbitrary"),
            vmem_limit_bytes=vmem_limit),
    )(query, key, value, value,
      wq, bq, wk, bk, wv, bv,
      wf, bf, gamma, beta)

    if return_attention:
        out, attn = result
        return out, attn.reshape(B * num_heads, S, S)
    return result


def _reference(query, key, value, params, *, num_heads):
    """Pure-JAX mirror of the PyTorch forward, for correctness checking (f32)."""
    B, S, D = query.shape
    middle = params["wq"].shape[1]
    dph = middle // num_heads
    scale = (dph // num_heads) ** (-0.5)

    qp = query @ params["wq"] + params["bq"]
    kp = key @ params["wk"] + params["bk"]
    vp = value @ params["wv"] + params["bv"]

    def split(x):
        return x.reshape(B, S, num_heads, dph).transpose(0, 2, 1, 3).reshape(B * num_heads, S, dph)

    qh, kh, vh = split(qp), split(kp), split(vp)
    attn = jax.nn.softmax(jnp.einsum("bqd,bkd->bqk", qh, kh) * scale, axis=-1)
    ctx = jnp.einsum("bqk,bkd->bqd", attn, vh)
    ctx = ctx.reshape(B, num_heads, S, dph).transpose(0, 2, 1, 3).reshape(B, S, middle)
    out = ctx @ params["wf"] + params["bf"]
    mean = out.mean(-1, keepdims=True)
    var = ((out - mean) ** 2).mean(-1, keepdims=True)
    out = (out - mean) / jnp.sqrt(var + 1e-5) * params["gamma"] + params["beta"]
    out = jnp.maximum(out, 0.0) + value
    return out, attn


def _init_params(key, model_dim, middle_dim):
    # Deterministic synthetic init (PyTorch nn.Linear-style uniform bounds).
    ks = jax.random.split(key, 8)

    def lin(kw, kb, fan_in, fan_out):
        bound = 1.0 / (fan_in ** 0.5)
        w = jax.random.uniform(kw, (fan_in, fan_out), jnp.float32, -bound, bound)
        b = jax.random.uniform(kb, (1, fan_out), jnp.float32, -bound, bound)
        return w, b

    wq, bq = lin(ks[0], ks[1], model_dim, middle_dim)
    wk, bk = lin(ks[2], ks[3], model_dim, middle_dim)
    wv, bv = lin(ks[4], ks[5], model_dim, middle_dim)
    wf, bf = lin(ks[6], ks[7], middle_dim, model_dim)
    return {
        "wq": wq, "bq": bq, "wk": wk, "bk": bk, "wv": wv, "bv": bv,
        "wf": wf, "bf": bf,
        "gamma": jnp.ones((1, model_dim), jnp.float32),   # LayerNorm weight
        "beta": jnp.zeros((1, model_dim), jnp.float32),   # LayerNorm bias
    }


if __name__ == "__main__":
    # Small but MXU-friendly config: dim_per_head = 128 (review item: keep the contracted
    # head dim a multiple of 128 so the attention matmuls are not lane-masked).
    B, S, MODEL_DIM = 2, 8, 256
    NUM_HEADS, COMPRESSION = 2, 1
    MIDDLE_DIM = MODEL_DIM // COMPRESSION     # dim_per_head = 128 -> scale = (128 // 2) ** -0.5

    root = jax.random.PRNGKey(0)
    kq, kk, kv, kp = jax.random.split(root, 4)
    query = jax.random.normal(kq, (B, S, MODEL_DIM), jnp.float32)
    key_in = jax.random.normal(kk, (B, S, MODEL_DIM), jnp.float32)
    value = jax.random.normal(kv, (B, S, MODEL_DIM), jnp.float32)
    params = _init_params(kp, MODEL_DIM, MIDDLE_DIM)

    out_expect, attn_expect = _reference(query, key_in, value, params, num_heads=NUM_HEADS)

    # f32 matmul path: tight check against the pure-JAX reference.
    out32, attn32 = multi_head_attention(query, key_in, value, params,
                                         num_heads=NUM_HEADS, compute_dtype=jnp.float32)
    jax.block_until_ready((out32, attn32))
    assert out32.shape == (B, S, MODEL_DIM) and attn32.shape == (B * NUM_HEADS, S, S)
    assert jnp.allclose(out32, out_expect, atol=5e-3, rtol=5e-3)
    assert jnp.allclose(attn32, attn_expect, atol=5e-3, rtol=5e-3)
    # Returned attention rows must sum to 1 (exact softmax normalization in-kernel).
    assert jnp.allclose(attn32.sum(-1), 1.0, atol=1e-5)

    # bf16 matmul path (default fast path on v6e/v7x): f32 accumulation, looser check.
    out16, attn16 = multi_head_attention(query, key_in, value, params, num_heads=NUM_HEADS)
    jax.block_until_ready((out16, attn16))
    assert jnp.allclose(out16, out_expect, atol=1e-1, rtol=1e-1)
    assert jnp.allclose(attn16, attn_expect, atol=3e-2, rtol=3e-2)

    # Attention output is optional: skips the O(B*H*S^2) HBM writeback when discarded.
    out_only = multi_head_attention(query, key_in, value, params, num_heads=NUM_HEADS,
                                    return_attention=False)
    jax.block_until_ready(out_only)
    assert jnp.allclose(out_only, out16, atol=1e-5, rtol=1e-5)

    print("KERNEL_OK")
</pallas_src>

<mosaic_0001>
module attributes {stable_mosaic.version = 11 : i64} {
  func.func @_mha_kernel(%arg0: i32, %arg1: i32, %arg2: i32, %arg3: memref<1x8x256xf32, #tpu.memory_space<vmem>>, %arg4: memref<1x8x256xf32, #tpu.memory_space<vmem>>, %arg5: memref<1x8x256xf32, #tpu.memory_space<vmem>>, %arg6: memref<1x8x256xf32, #tpu.memory_space<vmem>>, %arg7: memref<1x256x128xf32, #tpu.memory_space<vmem>>, %arg8: memref<1x1x128xf32, #tpu.memory_space<vmem>>, %arg9: memref<1x256x128xf32, #tpu.memory_space<vmem>>, %arg10: memref<1x1x128xf32, #tpu.memory_space<vmem>>, %arg11: memref<1x256x128xf32, #tpu.memory_space<vmem>>, %arg12: memref<1x1x128xf32, #tpu.memory_space<vmem>>, %arg13: memref<1x128x256xf32, #tpu.memory_space<vmem>>, %arg14: memref<1x256xf32, #tpu.memory_space<vmem>>, %arg15: memref<1x256xf32, #tpu.memory_space<vmem>>, %arg16: memref<1x256xf32, #tpu.memory_space<vmem>>, %arg17: memref<1x8x256xf32, #tpu.memory_space<vmem>>, %arg18: memref<1x1x8x8xf32, #tpu.memory_space<vmem>>, %arg19: memref<8x256xf32, #tpu.memory_space<vmem>>) attributes {dimension_semantics = [#tpu.dimension_semantics<parallel>, #tpu.dimension_semantics<parallel>, #tpu.dimension_semantics<arbitrary>], iteration_bounds = array<i64: 2, 1, 2>, scalar_prefetch = 0 : i64, scratch_operands = 1 : i64, tpu.core_type = #tpu.core_type<tc>, window_params = [{transform_indices = @transform_0, window_bounds = array<i64: 1, 8, 256>}, {transform_indices = @transform_1, window_bounds = array<i64: 1, 8, 256>}, {transform_indices = @transform_2, window_bounds = array<i64: 1, 8, 256>}, {transform_indices = @transform_3, window_bounds = array<i64: 1, 8, 256>}, {transform_indices = @transform_4, window_bounds = array<i64: 1, 256, 128>}, {transform_indices = @transform_5, window_bounds = array<i64: 1, 1, 128>}, {transform_indices = @transform_6, window_bounds = array<i64: 1, 256, 128>}, {transform_indices = @transform_7, window_bounds = array<i64: 1, 1, 128>}, {transform_indices = @transform_8, window_bounds = array<i64: 1, 256, 128>}, {transform_indices = @transform_9, window_bounds = array<i64: 1, 1, 128>}, {transform_indices = @transform_10, window_bounds = array<i64: 1, 128, 256>}, {pipeline_mode = #tpu.pipeline_mode<synchronous>, transform_indices = @transform_11, window_bounds = array<i64: 1, 256>}, {pipeline_mode = #tpu.pipeline_mode<synchronous>, transform_indices = @transform_12, window_bounds = array<i64: 1, 256>}, {pipeline_mode = #tpu.pipeline_mode<synchronous>, transform_indices = @transform_13, window_bounds = array<i64: 1, 256>}, {transform_indices = @transform_14, window_bounds = array<i64: 1, 8, 256>}, {transform_indices = @transform_15, window_bounds = array<i64: 1, 1, 8, 8>}]} {
    %c0 = arith.constant 0 : index
    %c0_0 = arith.constant 0 : index
    %c0_1 = arith.constant 0 : index
    %0 = vector.load %arg3[%c0, %c0_0, %c0_1] : memref<1x8x256xf32, #tpu.memory_space<vmem>>, vector<1x8x256xf32>
    %1 = vector.shape_cast %0 : vector<1x8x256xf32> to vector<8x256xf32>
    %c0_2 = arith.constant 0 : index
    %c0_3 = arith.constant 0 : index
    %c0_4 = arith.constant 0 : index
    %2 = vector.load %arg4[%c0_2, %c0_3, %c0_4] : memref<1x8x256xf32, #tpu.memory_space<vmem>>, vector<1x8x256xf32>
    %3 = vector.shape_cast %2 : vector<1x8x256xf32> to vector<8x256xf32>
    %c0_5 = arith.constant 0 : index
    %c0_6 = arith.constant 0 : index
    %c0_7 = arith.constant 0 : index
    %4 = vector.load %arg5[%c0_5, %c0_6, %c0_7] : memref<1x8x256xf32, #tpu.memory_space<vmem>>, vector<1x8x256xf32>
    %5 = vector.shape_cast %4 : vector<1x8x256xf32> to vector<8x256xf32>
    %c0_8 = arith.constant 0 : index
    %c0_9 = arith.constant 0 : index
    %c0_10 = arith.constant 0 : index
    %6 = vector.load %arg7[%c0_8, %c0_9, %c0_10] : memref<1x256x128xf32, #tpu.memory_space<vmem>>, vector<1x256x128xf32>
    %7 = vector.shape_cast %6 : vector<1x256x128xf32> to vector<256x128xf32>
    %cst = arith.constant dense<0.000000e+00> : vector<8x128xf32>
    %8 = tpu.matmul %1, %7, %cst {dimension_numbers = #tpu.dot_dimension_numbers<[1], [0], [0], [1], [0, 0, 1, 1], [], []>} : vector<8x256xf32>, vector<256x128xf32>, vector<8x128xf32> -> vector<8x128xf32>
    %c0_11 = arith.constant 0 : index
    %c0_12 = arith.constant 0 : index
    %c0_13 = arith.constant 0 : index
    %9 = vector.load %arg8[%c0_11, %c0_12, %c0_13] : memref<1x1x128xf32, #tpu.memory_space<vmem>>, vector<1x1x128xf32>
    %10 = vector.shape_cast %9 : vector<1x1x128xf32> to vector<1x128xf32>
    %11 = vector.broadcast %10 : vector<1x128xf32> to vector<8x128xf32>
    %12 = arith.addf %8, %11 : vector<8x128xf32>
    %c0_14 = arith.constant 0 : index
    %c0_15 = arith.constant 0 : index
    %c0_16 = arith.constant 0 : index
    %13 = vector.load %arg9[%c0_14, %c0_15, %c0_16] : memref<1x256x128xf32, #tpu.memory_space<vmem>>, vector<1x256x128xf32>
    %14 = vector.shape_cast %13 : vector<1x256x128xf32> to vector<256x128xf32>
    %cst_17 = arith.constant dense<0.000000e+00> : vector<8x128xf32>
    %15 = tpu.matmul %3, %14, %cst_17 {dimension_numbers = #tpu.dot_dimension_numbers<[1], [0], [0], [1], [0, 0, 1, 1], [], []>} : vector<8x256xf32>, vector<256x128xf32>, vector<8x128xf32> -> vector<8x128xf32>
    %c0_18 = arith.constant 0 : index
    %c0_19 = arith.constant 0 : index
    %c0_20 = arith.constant 0 : index
    %16 = vector.load %arg10[%c0_18, %c0_19, %c0_20] : memref<1x1x128xf32, #tpu.memory_space<vmem>>, vector<1x1x128xf32>
    %17 = vector.shape_cast %16 : vector<1x1x128xf32> to vector<1x128xf32>
    %18 = vector.broadcast %17 : vector<1x128xf32> to vector<8x128xf32>
    %19 = arith.addf %15, %18 : vector<8x128xf32>
    %c0_21 = arith.constant 0 : index
    %c0_22 = arith.constant 0 : index
    %c0_23 = arith.constant 0 : index
    %20 = vector.load %arg11[%c0_21, %c0_22, %c0_23] : memref<1x256x128xf32, #tpu.memory_space<vmem>>, vector<1x256x128xf32>
    %21 = vector.shape_cast %20 : vector<1x256x128xf32> to vector<256x128xf32>
    %cst_24 = arith.constant dense<0.000000e+00> : vector<8x128xf32>
    %22 = tpu.matmul %5, %21, %cst_24 {dimension_numbers = #tpu.dot_dimension_numbers<[1], [0], [0], [1], [0, 0, 1, 1], [], []>} : vector<8x256xf32>, vector<256x128xf32>, vector<8x128xf32> -> vector<8x128xf32>
    %c0_25 = arith.constant 0 : index
    %c0_26 = arith.constant 0 : index
    %c0_27 = arith.constant 0 : index
    %23 = vector.load %arg12[%c0_25, %c0_26, %c0_27] : memref<1x1x128xf32, #tpu.memory_space<vmem>>, vector<1x1x128xf32>
    %24 = vector.shape_cast %23 : vector<1x1x128xf32> to vector<1x128xf32>
    %25 = vector.broadcast %24 : vector<1x128xf32> to vector<8x128xf32>
    %26 = arith.addf %22, %25 : vector<8x128xf32>
    %27 = vector.shape_cast %12 : vector<8x128xf32> to vector<1x8x128xf32>
    %28 = vector.shape_cast %19 : vector<8x128xf32> to vector<1x8x128xf32>
    %29 = vector.shape_cast %26 : vector<8x128xf32> to vector<1x8x128xf32>
    "tpu.trace_start"() <{level = 10 : i32, message = "bqd,bkd->bqk"}> : () -> ()
    %cst_28 = arith.constant dense<0.000000e+00> : vector<1x8x8xf32>
    %30 = tpu.matmul %27, %28, %cst_28 {dimension_numbers = #tpu.dot_dimension_numbers<[2], [2], [1], [1], [0, 0, 0, 1, 1, 1], [0], [0]>} : vector<1x8x128xf32>, vector<1x8x128xf32>, vector<1x8x8xf32> -> vector<1x8x8xf32>
    "tpu.trace_stop"() : () -> ()
    %cst_29 = arith.constant dense<0xFF800000> : vector<1x8xf32>
    %31 = vector.multi_reduction <maximumf>, %30, %cst_29 [2] : vector<1x8x8xf32> to vector<1x8xf32>
    %32 = vector.shape_cast %31 : vector<1x8xf32> to vector<1x8x1xf32>
    %33 = vector.broadcast %32 : vector<1x8x1xf32> to vector<1x8x8xf32>
    %34 = arith.subf %30, %33 : vector<1x8x8xf32>
    %35 = math.exp %34 : vector<1x8x8xf32>
    %cst_30 = arith.constant dense<0.000000e+00> : vector<1x8xf32>
    %36 = vector.multi_reduction <add>, %35, %cst_30 [2] : vector<1x8x8xf32> to vector<1x8xf32>
    %37 = vector.shape_cast %36 : vector<1x8xf32> to vector<1x8x1xf32>
    %cst_31 = arith.constant 1.000000e+00 : f32
    %38 = vector.broadcast %cst_31 : f32 to vector<1x8x1xf32>
    %39 = arith.divf %38, %37 : vector<1x8x1xf32>
    %40 = vector.broadcast %39 : vector<1x8x1xf32> to vector<1x8x8xf32>
    %41 = arith.mulf %35, %40 : vector<1x8x8xf32>
    "tpu.trace_start"() <{level = 10 : i32, message = "bqk,bkd->bqd"}> : () -> ()
    %cst_32 = arith.constant dense<0.000000e+00> : vector<1x8x128xf32>
    %42 = tpu.matmul %41, %29, %cst_32 {dimension_numbers = #tpu.dot_dimension_numbers<[2], [1], [1], [2], [0, 0, 0, 1, 1, 2], [0], [0]>} : vector<1x8x8xf32>, vector<1x8x128xf32>, vector<1x8x128xf32> -> vector<1x8x128xf32>
    "tpu.trace_stop"() : () -> ()
    %43 = vector.shape_cast %41 : vector<1x8x8xf32> to vector<1x1x8x8xf32>
    %c0_33 = arith.constant 0 : index
    %c0_34 = arith.constant 0 : index
    %c0_35 = arith.constant 0 : index
    %c0_36 = arith.constant 0 : index
    %44 = vector.load %arg18[%c0_33, %c0_34, %c0_35, %c0_36] : memref<1x1x8x8xf32, #tpu.memory_space<vmem>>, vector<1x1x8x8xf32>
    tpu.vector_store %arg18[%c0_33, %c0_34, %c0_35, %c0_36], %43 {strides = array<i32>} : memref<1x1x8x8xf32, #tpu.memory_space<vmem>>, vector<1x1x8x8xf32>,
    %c0_i32 = arith.constant 0 : i32
    %45 = arith.cmpi eq, %arg2, %c0_i32 : i32
    %46 = arith.extui %45 : i1 to i32
    %c0_i32_37 = arith.constant 0 : i32
    %47 = arith.cmpi ne, %46, %c0_i32_37 : i32
    scf.if %47 {
      %cst_47 = arith.constant 0.000000e+00 : f32
      %58 = vector.broadcast %cst_47 : f32 to vector<8x256xf32>
      %c0_48 = arith.constant 0 : index
      %c0_49 = arith.constant 0 : index
      %59 = vector.load %arg19[%c0_48, %c0_49] : memref<8x256xf32, #tpu.memory_space<vmem>>, vector<8x256xf32>
      tpu.vector_store %arg19[%c0_48, %c0_49], %58 {strides = array<i32>} : memref<8x256xf32, #tpu.memory_space<vmem>>, vector<8x256xf32>,
    } else {
    }
    %c0_38 = arith.constant 0 : index
    %c0_39 = arith.constant 0 : index
    %48 = vector.load %arg19[%c0_38, %c0_39] : memref<8x256xf32, #tpu.memory_space<vmem>>, vector<8x256xf32>
    %49 = vector.shape_cast %42 : vector<1x8x128xf32> to vector<8x128xf32>
    %c0_40 = arith.constant 0 : index
    %c0_41 = arith.constant 0 : index
    %c0_42 = arith.constant 0 : index
    %50 = vector.load %arg13[%c0_40, %c0_41, %c0_42] : memref<1x128x256xf32, #tpu.memory_space<vmem>>, vector<1x128x256xf32>
    %51 = vector.shape_cast %50 : vector<1x128x256xf32> to vector<128x256xf32>
    %cst_43 = arith.constant dense<0.000000e+00> : vector<8x256xf32>
    %52 = tpu.matmul %49, %51, %cst_43 {dimension_numbers = #tpu.dot_dimension_numbers<[1], [0], [0], [1], [0, 0, 1, 1], [], []>} : vector<8x128xf32>, vector<128x256xf32>, vector<8x256xf32> -> vector<8x256xf32>
    %53 = arith.addf %48, %52 : vector<8x256xf32>
    %c0_44 = arith.constant 0 : index
    %c0_45 = arith.constant 0 : index
    %54 = vector.load %arg19[%c0_44, %c0_45] : memref<8x256xf32, #tpu.memory_space<vmem>>, vector<8x256xf32>
    tpu.vector_store %arg19[%c0_44, %c0_45], %53 {strides = array<i32>} : memref<8x256xf32, #tpu.memory_space<vmem>>, vector<8x256xf32>,
    %c1_i32 = arith.constant 1 : i32
    %55 = arith.cmpi eq, %arg2, %c1_i32 : i32
    %56 = arith.extui %55 : i1 to i32
    %c0_i32_46 = arith.constant 0 : i32
    %57 = arith.cmpi ne, %56, %c0_i32_46 : i32
    scf.if %57 {
      %c0_47 = arith.constant 0 : index
      %c0_48 = arith.constant 0 : index
      %58 = vector.load %arg19[%c0_47, %c0_48] : memref<8x256xf32, #tpu.memory_space<vmem>>, vector<8x256xf32>
      %c0_49 = arith.constant 0 : index
      %c0_50 = arith.constant 0 : index
      %59 = vector.load %arg14[%c0_49, %c0_50] : memref<1x256xf32, #tpu.memory_space<vmem>>, vector<1x256xf32>
      %60 = vector.broadcast %59 : vector<1x256xf32> to vector<8x256xf32>
      %61 = arith.addf %58, %60 : vector<8x256xf32>
      %cst_51 = arith.constant dense<0.000000e+00> : vector<8xf32>
      %62 = vector.multi_reduction <add>, %61, %cst_51 [1] : vector<8x256xf32> to vector<8xf32>
      %63 = vector.shape_cast %62 : vector<8xf32> to vector<8x1xf32>
      %cst_52 = arith.constant 2.560000e+02 : f32
      %64 = vector.broadcast %cst_52 : f32 to vector<8x1xf32>
      %65 = arith.divf %63, %64 : vector<8x1xf32>
      %66 = vector.broadcast %65 : vector<8x1xf32> to vector<8x256xf32>
      %67 = arith.subf %61, %66 : vector<8x256xf32>
      %68 = arith.mulf %67, %67 : vector<8x256xf32>
      %cst_53 = arith.constant dense<0.000000e+00> : vector<8xf32>
      %69 = vector.multi_reduction <add>, %68, %cst_53 [1] : vector<8x256xf32> to vector<8xf32>
      %70 = vector.shape_cast %69 : vector<8xf32> to vector<8x1xf32>
      %cst_54 = arith.constant 2.560000e+02 : f32
      %71 = vector.broadcast %cst_54 : f32 to vector<8x1xf32>
      %72 = arith.divf %70, %71 : vector<8x1xf32>
      %73 = vector.broadcast %65 : vector<8x1xf32> to vector<8x256xf32>
      %74 = arith.subf %61, %73 : vector<8x256xf32>
      %cst_55 = arith.constant 9.99999974E-6 : f32
      %75 = vector.broadcast %cst_55 : f32 to vector<8x1xf32>
      %76 = arith.addf %72, %75 : vector<8x1xf32>
      %77 = math.rsqrt %76 : vector<8x1xf32>
      %78 = vector.broadcast %77 : vector<8x1xf32> to vector<8x256xf32>
      %79 = arith.mulf %74, %78 : vector<8x256xf32>
      %c0_56 = arith.constant 0 : index
      %c0_57 = arith.constant 0 : index
      %80 = vector.load %arg15[%c0_56, %c0_57] : memref<1x256xf32, #tpu.memory_space<vmem>>, vector<1x256xf32>
      %81 = vector.broadcast %80 : vector<1x256xf32> to vector<8x256xf32>
      %82 = arith.mulf %79, %81 : vector<8x256xf32>
      %c0_58 = arith.constant 0 : index
      %c0_59 = arith.constant 0 : index
      %83 = vector.load %arg16[%c0_58, %c0_59] : memref<1x256xf32, #tpu.memory_space<vmem>>, vector<1x256xf32>
      %84 = vector.broadcast %83 : vector<1x256xf32> to vector<8x256xf32>
      %85 = arith.addf %82, %84 : vector<8x256xf32>
      %cst_60 = arith.constant 0.000000e+00 : f32
      %86 = vector.broadcast %cst_60 : f32 to vector<8x256xf32>
      %87 = arith.maximumf %85, %86 : vector<8x256xf32>
      %c0_61 = arith.constant 0 : index
      %c0_62 = arith.constant 0 : index
      %c0_63 = arith.constant 0 : index
      %88 = vector.load %arg6[%c0_61, %c0_62, %c0_63] : memref<1x8x256xf32, #tpu.memory_space<vmem>>, vector<1x8x256xf32>
      %89 = vector.shape_cast %87 : vector<8x256xf32> to vector<1x8x256xf32>
      %90 = arith.addf %88, %89 : vector<1x8x256xf32>
      %c0_64 = arith.constant 0 : index
      %c0_65 = arith.constant 0 : index
      %c0_66 = arith.constant 0 : index
      %91 = vector.load %arg17[%c0_64, %c0_65, %c0_66] : memref<1x8x256xf32, #tpu.memory_space<vmem>>, vector<1x8x256xf32>
      tpu.vector_store %arg17[%c0_64, %c0_65, %c0_66], %90 {strides = array<i32>} : memref<1x8x256xf32, #tpu.memory_space<vmem>>, vector<1x8x256xf32>,
    } else {
    }
    return
  }
  func.func @transform_0(%arg0: i32, %arg1: i32, %arg2: i32) -> (i32, i32, i32) {
    %c0_i32 = arith.constant 0 : i32
    %c0_i32_0 = arith.constant 0 : i32
    return %arg0, %arg1, %c0_i32 : i32, i32, i32
  }
  func.func @transform_1(%arg0: i32, %arg1: i32, %arg2: i32) -> (i32, i32, i32) {
    %c0_i32 = arith.constant 0 : i32
    %c0_i32_0 = arith.constant 0 : i32
    %c0_i32_1 = arith.constant 0 : i32
    return %arg0, %c0_i32, %c0_i32_0 : i32, i32, i32
  }
  func.func @transform_2(%arg0: i32, %arg1: i32, %arg2: i32) -> (i32, i32, i32) {
    %c0_i32 = arith.constant 0 : i32
    %c0_i32_0 = arith.constant 0 : i32
    %c0_i32_1 = arith.constant 0 : i32
    return %arg0, %c0_i32, %c0_i32_0 : i32, i32, i32
  }
  func.func @transform_3(%arg0: i32, %arg1: i32, %arg2: i32) -> (i32, i32, i32) {
    %c0_i32 = arith.constant 0 : i32
    %c0_i32_0 = arith.constant 0 : i32
    return %arg0, %arg1, %c0_i32 : i32, i32, i32
  }
  func.func @transform_4(%arg0: i32, %arg1: i32, %arg2: i32) -> (i32, i32, i32) {
    %c0_i32 = arith.constant 0 : i32
    %c0_i32_0 = arith.constant 0 : i32
    %c0_i32_1 = arith.constant 0 : i32
    return %arg2, %c0_i32, %c0_i32_0 : i32, i32, i32
  }
  func.func @transform_5(%arg0: i32, %arg1: i32, %arg2: i32) -> (i32, i32, i32) {
    %c0_i32 = arith.constant 0 : i32
    %c0_i32_0 = arith.constant 0 : i32
    %c0_i32_1 = arith.constant 0 : i32
    return %arg2, %c0_i32, %c0_i32_0 : i32, i32, i32
  }
  func.func @transform_6(%arg0: i32, %arg1: i32, %arg2: i32) -> (i32, i32, i32) {
    %c0_i32 = arith.constant 0 : i32
    %c0_i32_0 = arith.constant 0 : i32
    %c0_i32_1 = arith.constant 0 : i32
    return %arg2, %c0_i32, %c0_i32_0 : i32, i32, i32
  }
  func.func @transform_7(%arg0: i32, %arg1: i32, %arg2: i32) -> (i32, i32, i32) {
    %c0_i32 = arith.constant 0 : i32
    %c0_i32_0 = arith.constant 0 : i32
    %c0_i32_1 = arith.constant 0 : i32
    return %arg2, %c0_i32, %c0_i32_0 : i32, i32, i32
  }
  func.func @transform_8(%arg0: i32, %arg1: i32, %arg2: i32) -> (i32, i32, i32) {
    %c0_i32 = arith.constant 0 : i32
    %c0_i32_0 = arith.constant 0 : i32
    %c0_i32_1 = arith.constant 0 : i32
    return %arg2, %c0_i32, %c0_i32_0 : i32, i32, i32
  }
  func.func @transform_9(%arg0: i32, %arg1: i32, %arg2: i32) -> (i32, i32, i32) {
    %c0_i32 = arith.constant 0 : i32
    %c0_i32_0 = arith.constant 0 : i32
    %c0_i32_1 = arith.constant 0 : i32
    return %arg2, %c0_i32, %c0_i32_0 : i32, i32, i32
  }
  func.func @transform_10(%arg0: i32, %arg1: i32, %arg2: i32) -> (i32, i32, i32) {
    %c0_i32 = arith.constant 0 : i32
    %c0_i32_0 = arith.constant 0 : i32
    %c0_i32_1 = arith.constant 0 : i32
    return %arg2, %c0_i32, %c0_i32_0 : i32, i32, i32
  }
  func.func @transform_11(%arg0: i32, %arg1: i32, %arg2: i32) -> (i32, i32) {
    %c0_i32 = arith.constant 0 : i32
    %c0_i32_0 = arith.constant 0 : i32
    %c0_i32_1 = arith.constant 0 : i32
    return %c0_i32, %c0_i32_0 : i32, i32
  }
  func.func @transform_12(%arg0: i32, %arg1: i32, %arg2: i32) -> (i32, i32) {
    %c0_i32 = arith.constant 0 : i32
    %c0_i32_0 = arith.constant 0 : i32
    %c0_i32_1 = arith.constant 0 : i32
    return %c0_i32, %c0_i32_0 : i32, i32
  }
  func.func @transform_13(%arg0: i32, %arg1: i32, %arg2: i32) -> (i32, i32) {
    %c0_i32 = arith.constant 0 : i32
    %c0_i32_0 = arith.constant 0 : i32
    %c0_i32_1 = arith.constant 0 : i32
    return %c0_i32, %c0_i32_0 : i32, i32
  }
  func.func @transform_14(%arg0: i32, %arg1: i32, %arg2: i32) -> (i32, i32, i32) {
    %c0_i32 = arith.constant 0 : i32
    %c0_i32_0 = arith.constant 0 : i32
    return %arg0, %arg1, %c0_i32 : i32, i32, i32
  }
  func.func @transform_15(%arg0: i32, %arg1: i32, %arg2: i32) -> (i32, i32, i32, i32) {
    %c0_i32 = arith.constant 0 : i32
    %c0_i32_0 = arith.constant 0 : i32
    return %arg0, %arg2, %arg1, %c0_i32 : i32, i32, i32, i32
  }
}

</mosaic_0001>

<bundles_post_ra>
// kernel: tpu_custom_call.1
= control target key start
LH: loop header
LB: loop body
LE: loop exit
PB: predicated region body
PF: predicated region fallthrough
CT: control target
= control target key end

     0   :  { %s3698_s0 = inlined_call_operand.hbm [shape: f32[2,8,256], index: 0, kind: input, shape index: {}]   ;;  %s3699_s1 = inlined_call_operand.hbm [shape: f32[2,8,256], index: 1, kind: input, shape index: {}]   ;;  %s3700_s2 = inlined_call_operand.hbm [shape: f32[2,8,256], index: 2, kind: input, shape index: {}]   ;;  %s3701_s3 = inlined_call_operand.hbm [shape: f32[2,8,256], index: 3, kind: input, shape index: {}]   ;;  %s3702_s4 = inlined_call_operand.hbm [shape: f32[2,256,128], index: 4, kind: input, shape index: {}]   ;;  %s3703_s5 = inlined_call_operand.vmem [shape: f32[2,1,128], index: 5, kind: input, shape index: {}]   ;;  %s3704_s6 = inlined_call_operand.hbm [shape: f32[2,256,128], index: 6, kind: input, shape index: {}]   ;;  %s3705_s7 = inlined_call_operand.vmem [shape: f32[2,1,128], index: 7, kind: input, shape index: {}]   ;;  %s3706_s8 = inlined_call_operand.hbm [shape: f32[2,256,128], index: 8, kind: input, shape index: {}]   ;;  %s3707_s9 = inlined_call_operand.vmem [shape: f32[2,1,128], index: 9, kind: input, shape index: {}]   ;;  %s3708_s10 = inlined_call_operand.hbm [shape: f32[2,128,256], index: 10, kind: input, shape index: {}]   ;;  %s3709_s11 = inlined_call_operand.vmem [shape: f32[1,256], index: 11, kind: input, shape index: {}]   ;;  %s3710_s12 = inlined_call_operand.vmem [shape: f32[1,256], index: 12, kind: input, shape index: {}]   ;;  %s3711_s13 = inlined_call_operand.vmem [shape: f32[1,256], index: 13, kind: input, shape index: {}]   ;;  %s3712_s14 = inlined_call_operand.hbm [shape: f32[2,8,256], index: 14, kind: output, shape index: {0}]   ;;  %s3713_s15 = inlined_call_operand.hbm [shape: f32[2,2,8,8], index: 15, kind: output, shape index: {1}]  }
   0x1   :  { %3758 = sst [smem:[#allocation50_spill]] %s3699_s1 }
   0x2   :  { %3759 = sst [smem:[#allocation51_spill]] %s3701_s3 }
   0x3   :  { %3760 = sst [smem:[#allocation52_spill]] %s3703_s5 }
   0x4   :  { %3761 = sst [smem:[#allocation53_spill]] %s3704_s6 }
   0x5   :  { %3762 = sst [smem:[#allocation54_spill]] %s3705_s7 }
   0x6   :  { %3763 = sst [smem:[#allocation55_spill]] %s3707_s9 }
   0x7   :  { %3764 = sst [smem:[#allocation56_spill]] %s3709_s11 }
   0x8   :  { %3765 = sst [smem:[#allocation57_spill]] %s3710_s12 }
   0x9   :  { %3766 = sst [smem:[#allocation58_spill]] %s3711_s13 }
   0xa   :  { %3767 = sst [smem:[#allocation59_spill]] %s3712_s14 }
   0xb   :  { %3768 = sst [smem:[#allocation60_spill]] %s3713_s15 }
   0xc   :  { %21 = vsyncpa [#allocation4], 0 }
   0xd   :  { %23 = vsyncpa [#allocation4 + $0x1], 0 }
   0xe   :  { %24 = vsyncpa [#allocation7], 0 }
   0xf   :  { %26 = vsyncpa [#allocation7 + $0x1], 0 }
  0x10   :  { %27 = vsyncpa [#allocation10], 0 }
  0x11   :  { %29 = vsyncpa [#allocation10 + $0x1], 0 }
  0x12   :  { %30 = vsyncpa [#allocation13], 0 }
  0x13   :  { %32 = vsyncpa [#allocation13 + $0x1], 0 }
  0x14   :  { %33 = vsyncpa [#allocation16], 0 }
  0x15   :  { %35 = vsyncpa [#allocation16 + $0x1], 0 }
  0x16   :  { %36 = vsyncpa [#allocation5], 0 }
  0x17   :  { %38 = vsyncpa [#allocation5 + $0x1], 0 }
  0x18   :  { %39 = vsyncpa [#allocation19], 0 }
  0x19   :  { %41 = vsyncpa [#allocation19 + $0x1], 0  ;;  %s2910_s18 = smov 0   ;;  %s2912_s19 = smov 0  }
  0x1a   :  { %s2914_s20 = smov 0   ;;  %s2916_s21 = smov 0  }
  0x1b   :  { %s2918_s22 = smov 0   ;;  %s2920_s23 = smov 0  }
  0x1c   :  { %s2922_s24 = smov 0   ;;  %s2924_s25 = smov 0  }
  0x1d   :  { %s2926_s26 = smov 0   ;;  %s2928_s27 = smov 0  }
  0x1e   :  { %s2930_s28 = smov 0   ;;  %s2932_s29 = smov 0  }
  0x1f   :  { %s2934_s30 = smov 0   ;;  %s2936_s16 = smov 0  }
  0x20 LB: > { %3769 = sst [smem:[#allocation28_spill]] %s2759_s18  ;;  %s2979_s17 = sadd.s32 4294967295, %s2811_s16   ;;  %s2811_s16 = sphi %s2936_s16, %s47_s16   ;;  %s2807_s30 = sphi %s2934_s30, %s3869_s30   ;;  %s2803_s29 = sphi %s2932_s29, %s3878_s29   ;;  %s2799_s28 = sphi %s2930_s28, %s3877_s28   ;;  %s2795_s27 = sphi %s2928_s27, %s3876_s27   ;;  %s2791_s26 = sphi %s2926_s26, %s3875_s26   ;;  %s2787_s25 = sphi %s2924_s25, %s3874_s25   ;;  %s2783_s24 = sphi %s2922_s24, %s3864_s24   ;;  %s2779_s23 = sphi %s2920_s23, %s3873_s23   ;;  %s2775_s22 = sphi %s2918_s22, %s3872_s22   ;;  %s2771_s21 = sphi %s2916_s21, %s3862_s21   ;;  %s2767_s20 = sphi %s2914_s20, %s3871_s20   ;;  %s2763_s19 = sphi %s2912_s19, %s3870_s19   ;;  %s2759_s18 = sphi %s2910_s18, %s3861_s18  }
  0x21   : > { %3770 = sst [smem:[#allocation29_spill]] %s2763_s19  ;;  %s1886_s15 = sadd.s32 4294967294, %s2811_s16  }
  0x22   : > { %3771 = sst [smem:[#allocation30_spill]] %s2775_s22  ;;  %p82_p0 = scmp.ne.s32.totalorder %s2791_s26, %s2787_s25 }
  0x23   : > { %3772 = sst [smem:[#allocation31_spill]] %s2783_s24  ;;  %p83_p1 = scmp.eq.s32.totalorder %s2811_s16, 0 }
  0x24   : > { %3773 = sst [smem:[#allocation32_spill]] %s2787_s25  ;;  %p88_p2 = scmp.ne.s32.totalorder %s2787_s25, %s2783_s24 }
  0x25   : > { %3774 = sst [smem:[#allocation33_spill]] %s2795_s27  ;;  %p89_p3 = scmp.eq.s32.totalorder %s2979_s17, 0 }
  0x26   : > { %3775 = sst [smem:[#allocation34_spill]] %s2799_s28  ;;  %p2990_p4 = por %p83_p1, %p82_p0 }
  0x27   : > { %3776 = sst [smem:[#allocation35_spill]] %s2803_s29  ;;  %p188_p5 = scmp.ne.s32.totalorder %s2779_s23, %s2775_s22 }
  0x28   : > { %3777 = sst [smem:[#allocation36_spill]] %s2807_s30  ;;  %p2996_p6 = por %p89_p3, %p88_p2 }
  0x29   : > { %3778 = sst [smem:[#allocation37_spill]] %s2811_s16  ;;  %p194_p7 = scmp.ne.s32.totalorder %s2775_s22, %s2771_s21 }
  0x2a   : > { %3779 = sst [smem:[#allocation38_spill]] %s2979_s17  ;;  %p3001_p8 = por %p188_p5, %p83_p1 }
  0x2b   : > { %s3781_s12 = scalar_select %p2996_p6, 1, 0 }
  0x2c   : > { %p439_p9 = scmp.eq.s32.totalorder %s2979_s17, 3  ;;  %p3006_p10 = por %p194_p7, %p89_p3 }
  0x2d   : > { %3782 = sst [smem:[#allocation39_spill]] %s3781_s12  ;;  %p445_p11 = scmp.eq.s32.totalorder %s1886_s15, 3 }
  0x2e   : > { %s3784_s14 = scalar_select %p3006_p10, 1, 0 }
  0x2f   : > { %p3010_p12 = por %p439_p9, %p82_p0  ;;  %p468_p13 = scmp.ne.s32.totalorder %s2767_s20, %s2763_s19 }
  0x30   : > { %3785 = sst [smem:[#allocation40_spill]] %s3784_s14  ;;  %p3016_p6 = por %p445_p11, %p88_p2 }
  0x31   : > { %s3786_s24 = scalar_select %p3010_p12, 1, 0 }
  0x32   : > { %s3788_s11 = scalar_select %p3016_p6, 1, 0 }
  0x33   : > { %3787 = sst [smem:[#allocation41_spill]] %s3786_s24  ;;  %p474_p1 = scmp.ne.s32.totalorder %s2763_s19, %s2759_s18 }
  0x34   : > { %3789 = sst [smem:[#allocation42_spill]] %s3788_s11  ;;  %p3022_p5 = por %p468_p13, %p439_p9 }
  0x35   : > { %p3026_p3 = por %p474_p1, %p445_p11  ;;  %p2246_p7 = scmp.lt.s32.totalorder %s2811_s16, 4 }
  0x36   : > { %s3790_s21 = scalar_select %p3022_p5, 1, 0 }
  0x37   : > { %s3792_s9 = scalar_select %p3026_p3, 1, 0 }
  0x38   : > { %3791 = sst [smem:[#allocation43_spill]] %s3790_s21  ;;  %s3728_s15 = sand.u32 1, %s2791_s26  }
  0x39   : > { %3793 = sst [smem:[#allocation44_spill]] %s3792_s9  ;;  %s3033_s5 = sshll.u32 %s2807_s30, 8 }
  0x3a   : > { %s3037_s24 = sshll.u32 %s3728_s15, 4  ;;  %p3041_p0 = pnand %p2246_p7, %p2990_p4 }
  0x3b   : > { %s3046_s11 = sand.u32 1, %s2811_s16   ;;  %s3795_s1 = sld [smem:[#allocation50_spill]] }
  0x3c   : > { %s3794_s18 = scalar_select %p3041_p0, 1, 0 }
  0x3d   : > { %s529_s15 = scalar_lea.vmem [#allocation6], %s3037_s24  ;;  %p3059_p2 = pnand %p2246_p7, %p3001_p8 }
  0x3e   : > { %s537_s28 = sshll.u32 %s529_s15, 4  ;;  %p3068_p9 = pneg %p3041_p0  ;;  %s3055_s28 = int_to_ptr.vmem [resolvable:$true] %s537_s28 }
  0x3f   : > { %s3796_s7 = scalar_select %p3059_p2, 1, 0 }
  0x40   : > { %s3797_s19 = scalar_select %p3068_p9, 1, 0 }
  0x41   : > { %s3052_s9 = scalar_lea.hbm %s3795_s1, %s3033_s5  ;;  %s2378_s13 = scalar_lea.hbm %s3795_s1, 512 }
  0x42   : > { %s2373_s14 = scalar_lea.hbm %s3052_s9, 256  ;;  %p2379_p8 = scmp.lt.u32.totalorder %s3052_s9, %s3795_s1 }
  0x43   : > { %p2374_p4 = scmp.ne.s32.totalorder %s3052_s9, %s2373_s14  ;;  %p2380_p1 = scmp.lt.u32.totalorder %s2378_s13, %s2373_s14 }
  0x44   : > { %p2382_p3 = scmp.lt.u32.totalorder %s2373_s14, %s3052_s9 }
  0x45   : > { %p2376_p11 = pnand %p3068_p9, %p2374_p4  ;;  %p2381_p7 = por %p2380_p1, %p2379_p8 }
  0x47   : > { %p2377_p13 = pneg %p2376_p11  ;;  %p2383_p6 = por %p2382_p3, %p2381_p7 }
  0x49   : > { %p2384_p5 = pnand %p2383_p6, %p2377_p13 }
  0x4b   : > { %2387 = shalt.err (!%p2384_p5)
}
  0x4c   : > { %s2388_s27 = scalar_lea.vmem %s3055_s28, 256  ;;  %s2813_s21 = smov [#allocation6]  }
  0x4d   : > { %p2389_p4 = scmp.ne.s32.totalorder %s3055_s28, %s2388_s27  ;;  %s2393_s15 = sshll.u32 %s2813_s21, 4  ;;  %s2394_s15 = int_to_ptr.vmem [resolvable:$false] %s2393_s15 }
  0x4e   : > { %s2395_s22 = scalar_lea.vmem %s2394_s15, 512  ;;  %p2396_p10 = scmp.lt.s32.totalorder %s3055_s28, %s2394_s15 }
  0x4f   : > { %p2391_p11 = pnand %p2389_p4, %p3068_p9  ;;  %p2397_p2 = scmp.lt.s32.totalorder %s2395_s22, %s2388_s27 }
  0x51   : > { %p2392_p12 = pneg %p2391_p11  ;;  %p2398_p8 = por %p2397_p2, %p2396_p10 }
  0x53   : > { %p2399_p1 = pnand %p2398_p8, %p2392_p12 }
  0x55   : > { %2402 = shalt.err (!%p2399_p1)
}
  0x56   : > { %s3798_s14 = scalar_lea.sflag [#allocation7], %s3046_s11  ;;  %p1913_p6 = scmp.ge.s32.totalorder %s2811_s16, 1 }
  0x57   : > { %2220 = dma.hbm_to_vmem [thread:$0]  (!%p3041_p0), %s3052_s9, 256, %s3055_s28, %s3798_s14  }
  0x58   : > { %p684_p5 = scmp.lt.s32.totalorder %s2811_s16, 5  ;;  %s3801_s3 = sld [smem:[#allocation51_spill]] }
  0x59   : > { %s567_s15 = scalar_lea.vmem [#allocation9], %s3037_s24 }
  0x5a   : > { %p3095_p3 = pnand %p1913_p6, %p684_p5  ;;  %s577_s22 = sshll.u32 %s567_s15, 4  ;;  %s578_s22 = int_to_ptr.vmem [resolvable:$true] %s577_s22 }
  0x5c   : > { %s3799_s27 = scalar_select %p3095_p3, 1, 0 }
  0x5e   : > { %3800 = sst [smem:[#allocation45_spill]] %s3799_s27  ;;  %s3103_s21 = scalar_lea.hbm %s3801_s3, %s3033_s5 }
  0x5f   : > { %s2403_s9 = scalar_lea.hbm %s3103_s21, 256  ;;  %s2408_s16 = scalar_lea.hbm %s3801_s3, 512 }
  0x60   : > { %p2404_p10 = scmp.ne.s32.totalorder %s3103_s21, %s2403_s9  ;;  %p2409_p13 = scmp.lt.u32.totalorder %s3103_s21, %s3801_s3 }
  0x61   : > { %p2410_p7 = scmp.lt.u32.totalorder %s2408_s16, %s2403_s9  ;;  %p2412_p11 = scmp.lt.u32.totalorder %s2403_s9, %s3103_s21 }
  0x62   : > { %p2406_p12 = pnand %p2404_p10, %p3068_p9 }
  0x63   : > { %p2411_p4 = por %p2410_p7, %p2409_p13 }
  0x64   : > { %p2407_p2 = pneg %p2406_p12 }
  0x65   : > { %p2413_p8 = por %p2412_p11, %p2411_p4 }
  0x67   : > { %p2414_p1 = pnand %p2413_p8, %p2407_p2 }
  0x69   : > { %2417 = shalt.err (!%p2414_p1)
}
  0x6a   : > { %s2418_s15 = scalar_lea.vmem %s578_s22, 256  ;;  %s2814_s1 = smov [#allocation9]  }
  0x6b   : > { %p2419_p6 = scmp.ne.s32.totalorder %s578_s22, %s2418_s15  ;;  %s2423_s12 = sshll.u32 %s2814_s1, 4  ;;  %s2424_s12 = int_to_ptr.vmem [resolvable:$false] %s2423_s12 }
  0x6c   : > { %s2425_s28 = scalar_lea.vmem %s2424_s12, 512  ;;  %p2426_p12 = scmp.lt.s32.totalorder %s578_s22, %s2424_s12 }
  0x6d   : > { %p2421_p5 = pnand %p2419_p6, %p3068_p9  ;;  %p2427_p3 = scmp.lt.s32.totalorder %s2425_s28, %s2418_s15 }
  0x6f   : > { %p2422_p10 = pneg %p2421_p5  ;;  %p2428_p0 = por %p2427_p3, %p2426_p12 }
  0x71   : > { %p2429_p7 = pnand %p2428_p0, %p2422_p10 }
  0x73   : > { %2432 = shalt.err (!%p2429_p7)
}
  0x74   : > { %p3802_p13 = scmp.ne.s32.totalorder %s3794_s18, 0  ;;  %s3803_s16 = scalar_lea.sflag [#allocation10], %s3046_s11 }
  0x75   : > { %s59_s1 = sadd.s32 1, %s2803_s29  ;;  %s181_s12 = sadd.s32 1, %s2779_s23 }
  0x76   : > { %2226 = dma.hbm_to_vmem [thread:$0]  (!%p3802_p13), %s3103_s21, 256, %s578_s22, %s3803_s16  }
  0x77   : > { %p60_p0 = scmp.ge.s32.totalorder %s59_s1, 2  ;;  %s458_s9 = sadd.s32 1, %s2767_s20 }
  0x78   : > { %s3746_s14 = sand.u32 1, %s2779_s23   ;;  %s3131_s17 = sshll.u32 %s2803_s29, 12 }
  0x79   : > { %s3880_s1 = smov (%p60_p0, %s59_s1), 0  ;;  %s3805_s13 = sadd.s32 1, %s2807_s30 }
  0x7a   : > { %3804 = sst [smem:[#allocation46_spill]] %s3880_s1  ;;  %s3882_s13 = smov (!%p60_p0, %s3805_s13), %s2807_s30 }
  0x7b   : > { %s178_s15 = ssub.s32 %s2803_s29, %s3880_s1  ;;  %s3142_s21 = sshll.u32 %s3746_s14, 8 }
  0x7c   : > { %p68_p3 = scmp.ge.s32.totalorder %s3882_s13, 2  ;;  %p179_p2 = scmp.eq.s32.totalorder %s178_s15, 0 }
  0x7d   : > { %s3808_s6 = sld [smem:[#allocation53_spill]]  ;;  %s3809_s14 = sadd.s32 1, %s2791_s26 }
  0x7e   : > { %s3884_s13 = smov (%p68_p3, %s3882_s13), 0  ;;  %p3811_p1 = scmp.ne.s32.totalorder %s3796_s7, 0 }
  0x7f   : > { %3806 = sst [smem:[#allocation47_spill]] %s3884_s13  ;;  %s70_s28 = ssub.s32 %s2807_s30, %s3884_s13 }
  0x80   : > { %s3147_s22 = scalar_select %p179_p2, %s2779_s23, %s181_s12  }
  0x81   : > { %p73_p4 = scmp.eq.s32.totalorder %s70_s28, 0  ;;  %s453_s16 = sor.u32 %s178_s15, %s70_s28 }
  0x82   : > { %3807 = sst [smem:[#allocation48_spill]] %s3147_s22  ;;  %p456_p11 = scmp.eq.s32.totalorder %s453_s16, 0 }
  0x83   : > { %s3155_s1 = scalar_lea.hbm %s3808_s6, %s3131_s17  ;;  %s615_s12 = scalar_lea.vmem [#allocation12], %s3142_s21 }
  0x84   : > { %s3160_s29 = scalar_select %p73_p4, %s2791_s26, %s3809_s14  }
  0x85   : > { %s3163_s27 = scalar_select %p456_p11, %s2767_s20, %s458_s9  }
  0x86   : > { %3810 = sst [smem:[#allocation49_spill]] %s3160_s29  ;;  %s622_s22 = sshll.u32 %s615_s12, 4  ;;  %s3166_s22 = int_to_ptr.vmem [resolvable:$true] %s622_s22 }
  0x87   : > { %s2433_s28 = scalar_lea.hbm %s3155_s1, 4096  ;;  %p3173_p6 = pneg %p3811_p1 }
  0x88   : > { %p2434_p8 = scmp.ne.s32.totalorder %s3155_s1, %s2433_s28  ;;  %s2438_s9 = scalar_lea.hbm %s3808_s6, 8192 }
  0x89   : > { %s3812_s3 = scalar_select %p3173_p6, 1, 0 }
  0x8a   : > { %p2436_p5 = pnand %p3173_p6, %p2434_p8  ;;  %p2439_p12 = scmp.lt.u32.totalorder %s3155_s1, %s3808_s6 }
  0x8b   : > { %p2440_p7 = scmp.lt.u32.totalorder %s2438_s9, %s2433_s28  ;;  %p2442_p3 = scmp.lt.u32.totalorder %s2433_s28, %s3155_s1 }
  0x8c   : > { %p2437_p10 = pneg %p2436_p5 }
  0x8d   : > { %p2441_p0 = por %p2440_p7, %p2439_p12 }
  0x8f   : > { %p2443_p2 = por %p2442_p3, %p2441_p0 }
  0x91   : > { %p2444_p4 = pnand %p2443_p2, %p2437_p10 }
  0x93   : > { %2447 = shalt.err (!%p2444_p4)
}
  0x94   : > { %s2448_s15 = scalar_lea.vmem %s3166_s22, 4096  ;;  %s2815_s25 = smov [#allocation12]  }
  0x95   : > { %p2449_p11 = scmp.ne.s32.totalorder %s3166_s22, %s2448_s15  ;;  %s2453_s14 = sshll.u32 %s2815_s25, 4  ;;  %s2454_s14 = int_to_ptr.vmem [resolvable:$false] %s2453_s14 }
  0x96   : > { %s2455_s16 = scalar_lea.vmem %s2454_s14, 8192  ;;  %p2456_p13 = scmp.lt.s32.totalorder %s3166_s22, %s2454_s14 }
  0x97   : > { %p2451_p8 = pnand %p2449_p11, %p3173_p6  ;;  %p2457_p9 = scmp.lt.s32.totalorder %s2455_s16, %s2448_s15 }
  0x99   : > { %p2452_p5 = pneg %p2451_p8  ;;  %p2458_p12 = por %p2457_p9, %p2456_p13 }
  0x9b   : > { %p2459_p7 = pnand %p2458_p12, %p2452_p5 }
  0x9d   : > { %2462 = shalt.err (!%p2459_p7)
}
  0x9e   : > { %s3753_s28 = smov 128   ;;  %s2817_s9 = smov 8  }
  0x9f   : > { %s3813_s12 = scalar_lea.sflag [#allocation13], %s3046_s11  ;;  %s3205_s14 = scalar_lea.hbm %s3698_s0, %s3033_s5 }
  0xa0   : > { %2232 = dma.hbm_to_vmem [thread:$0]  (!%p3811_p1), %s3155_s1, 4096, %s3166_s22, %s3813_s12, %s3753_s28, %s3753_s28, %s2817_s9  }
  0xa1   : > { %s508_s16 = scalar_lea.vmem [#allocation3], %s3037_s24  ;;  %s3814_s13 = sand.u32 1, %s2791_s26  }
  0xa2   : > { %s518_s6 = sshll.u32 %s508_s16, 4  ;;  %s505_s30 = scalar_lea.sflag [#allocation4], %s3814_s13  ;;  %s519_s6 = int_to_ptr.vmem [resolvable:$true] %s518_s6 }
  0xa3   : > { %s2463_s29 = scalar_lea.hbm %s3205_s14, 256  ;;  %p3815_p13 = scmp.ne.s32.totalorder %s3797_s19, 0 }
  0xa4   : > { %p2464_p9 = scmp.ne.s32.totalorder %s3205_s14, %s2463_s29  ;;  %s2468_s12 = scalar_lea.hbm %s3698_s0, 512 }
  0xa5   : > { %p2469_p3 = scmp.lt.u32.totalorder %s3205_s14, %s3698_s0  ;;  %p2470_p2 = scmp.lt.u32.totalorder %s2468_s12, %s2463_s29 }
  0xa6   : > { %p2466_p10 = pnand %p2464_p9, %p3815_p13  ;;  %p2472_p11 = scmp.lt.u32.totalorder %s2463_s29, %s3205_s14 }
  0xa7   : > { %p2471_p4 = por %p2470_p2, %p2469_p3 }
  0xa8   : > { %p2467_p0 = pneg %p2466_p10 }
  0xa9   : > { %p2473_p8 = por %p2472_p11, %p2471_p4 }
  0xab   : > { %p2474_p5 = pnand %p2473_p8, %p2467_p0 }
  0xad   : > { %2477 = shalt.err (!%p2474_p5)
}
  0xae   : > { %s2478_s13 = scalar_lea.vmem %s519_s6, 256  ;;  %s2818_s16 = smov [#allocation3]  }
  0xaf   : > { %p2479_p12 = scmp.ne.s32.totalorder %s519_s6, %s2478_s13  ;;  %s2483_s28 = sshll.u32 %s2818_s16, 4  ;;  %s2484_s28 = int_to_ptr.vmem [resolvable:$false] %s2483_s28 }
  0xb0   : > { %s2485_s1 = scalar_lea.vmem %s2484_s28, 512  ;;  %p2486_p10 = scmp.lt.s32.totalorder %s519_s6, %s2484_s28 }
  0xb1   : > { %p2481_p7 = pnand %p2479_p12, %p3815_p13  ;;  %p2487_p1 = scmp.lt.s32.totalorder %s2485_s1, %s2478_s13 }
  0xb3   : > { %p2482_p9 = pneg %p2481_p7  ;;  %p2488_p6 = por %p2487_p1, %p2486_p10 }
  0xb5   : > { %p2489_p2 = pnand %p2488_p6, %p2482_p9 }
  0xb7   : > { %2492 = shalt.err (!%p2489_p2)
}
  0xb8   : > { %p3816_p3 = scmp.ne.s32.totalorder %s3794_s18, 0  ;;  %s3231_s12 = scalar_lea.hbm %s3700_s2, %s3033_s5 }
  0xb9   : > { %s548_s28 = scalar_lea.vmem [#allocation8], %s3037_s24  ;;  %s2493_s25 = scalar_lea.hbm %s3231_s12, 256 }
  0xba   : > { %2217 = dma.hbm_to_vmem [thread:$0]  (!%p3816_p3), %s3205_s14, 256, %s519_s6, %s505_s30  }
  0xbb   : > { %s556_s15 = sshll.u32 %s548_s28, 4  ;;  %p2494_p1 = scmp.ne.s32.totalorder %s3231_s12, %s2493_s25  ;;  %s557_s15 = int_to_ptr.vmem [resolvable:$true] %s556_s15 }
  0xbc   : > { %s2498_s6 = scalar_lea.hbm %s3700_s2, 512  ;;  %p2499_p4 = scmp.lt.u32.totalorder %s3231_s12, %s3700_s2 }
  0xbd   : > { %p2496_p6 = pnand %p2494_p1, %p3815_p13  ;;  %p2500_p11 = scmp.lt.u32.totalorder %s2498_s6, %s2493_s25 }
  0xbe   : > { %p2502_p5 = scmp.lt.u32.totalorder %s2493_s25, %s3231_s12 }
  0xbf   : > { %p2497_p0 = pneg %p2496_p6  ;;  %p2501_p8 = por %p2500_p11, %p2499_p4 }
  0xc1   : > { %p2503_p12 = por %p2502_p5, %p2501_p8 }
  0xc3   : > { %p2504_p7 = pnand %p2503_p12, %p2497_p0 }
  0xc5   : > { %2507 = shalt.err (!%p2504_p7)
}
  0xc6   : > { %s2508_s5 = scalar_lea.vmem %s557_s15, 256  ;;  %s2819_s24 = smov [#allocation8]  }
  0xc7   : > { %p2509_p9 = scmp.ne.s32.totalorder %s557_s15, %s2508_s5  ;;  %s2513_s1 = sshll.u32 %s2819_s24, 4  ;;  %s2514_s1 = int_to_ptr.vmem [resolvable:$false] %s2513_s1 }
  0xc8   : > { %s2515_s29 = scalar_lea.vmem %s2514_s1, 512  ;;  %p2516_p1 = scmp.lt.s32.totalorder %s557_s15, %s2514_s1 }
  0xc9   : > { %p2511_p10 = pnand %p2509_p9, %p3815_p13  ;;  %p2517_p6 = scmp.lt.s32.totalorder %s2515_s29, %s2508_s5 }
  0xcb   : > { %p2512_p2 = pneg %p2511_p10  ;;  %p2518_p3 = por %p2517_p6, %p2516_p1 }
  0xcd   : > { %p2519_p4 = pnand %p2518_p3, %p2512_p2 }
  0xcf   : > { %2522 = shalt.err (!%p2519_p4)
}
  0xd0   : > { %p3817_p11 = scmp.ne.s32.totalorder %s3794_s18, 0  ;;  %s3818_s22 = scalar_lea.sflag [#allocation7], %s3046_s11 }
  0xd1   : > { %s3257_s25 = scalar_lea.hbm %s3702_s4, %s3131_s17  ;;  %s588_s13 = scalar_lea.vmem [#allocation11], %s3142_s21 }
  0xd2   : > { %2223 = dma.hbm_to_vmem [thread:$0]  (!%p3817_p11), %s3231_s12, 256, %s557_s15, %s3818_s22  }
  0xd3   : > { %s595_s16 = sshll.u32 %s588_s13, 4  ;;  %s2523_s18 = scalar_lea.hbm %s3257_s25, 4096  ;;  %s3260_s16 = int_to_ptr.vmem [resolvable:$true] %s595_s16 }
  0xd4   : > { %p2524_p13 = scmp.ne.s32.totalorder %s3257_s25, %s2523_s18  ;;  %p3819_p3 = scmp.ne.s32.totalorder %s3812_s3, 0 }
  0xd5   : > { %s2528_s15 = scalar_lea.hbm %s3702_s4, 8192  ;;  %p2529_p5 = scmp.lt.u32.totalorder %s3257_s25, %s3702_s4 }
  0xd6   : > { %p2526_p0 = pnand %p2524_p13, %p3819_p3  ;;  %p2530_p12 = scmp.lt.u32.totalorder %s2528_s15, %s2523_s18 }
  0xd7   : > { %p2532_p9 = scmp.lt.u32.totalorder %s2523_s18, %s3257_s25 }
  0xd8   : > { %p2527_p8 = pneg %p2526_p0  ;;  %p2531_p7 = por %p2530_p12, %p2529_p5 }
  0xda   : > { %p2533_p10 = por %p2532_p9, %p2531_p7 }
  0xdc   : > { %p2534_p2 = pnand %p2533_p10, %p2527_p8 }
  0xde   : > { %2537 = shalt.err (!%p2534_p2)
}
  0xdf   : > { %s2538_s5 = scalar_lea.vmem %s3260_s16, 4096  ;;  %s2820_s24 = smov [#allocation11]  }
  0xe0   : > { %p2539_p1 = scmp.ne.s32.totalorder %s3260_s16, %s2538_s5  ;;  %s2543_s1 = sshll.u32 %s2820_s24, 4  ;;  %s2544_s1 = int_to_ptr.vmem [resolvable:$false] %s2543_s1 }
  0xe1   : > { %s2545_s29 = scalar_lea.vmem %s2544_s1, 8192  ;;  %p2546_p11 = scmp.lt.s32.totalorder %s3260_s16, %s2544_s1 }
  0xe2   : > { %p2541_p6 = pnand %p2539_p1, %p3819_p3  ;;  %p2547_p13 = scmp.lt.s32.totalorder %s2545_s29, %s2538_s5 }
  0xe4   : > { %p2542_p4 = pneg %p2541_p6  ;;  %p2548_p0 = por %p2547_p13, %p2546_p11 }
  0xe6   : > { %p2549_p5 = pnand %p2548_p0, %p2542_p4 }
  0xe8   : > { %2552 = shalt.err (!%p2549_p5)
}
  0xe9   : > { %p3820_p8 = scmp.ne.s32.totalorder %s3796_s7, 0  ;;  %s3821_s22 = smov 128  }
  0xea   : > { %s3822_s19 = scalar_lea.sflag [#allocation10], %s3046_s11  ;;  %s3292_s18 = scalar_lea.hbm %s3706_s8, %s3131_s17 }
  0xeb   : > { %2229 = dma.hbm_to_vmem [thread:$0]  (!%p3820_p8), %s3257_s25, 4096, %s3260_s16, %s3822_s19, %s3821_s22, %s3821_s22, %s2817_s9  }
  0xec   : > { %s642_s6 = scalar_lea.vmem [#allocation14], %s3142_s21  ;;  %s2553_s15 = scalar_lea.hbm %s3292_s18, 4096 }
  0xed   : > { %s649_s12 = sshll.u32 %s642_s6, 4  ;;  %p2554_p12 = scmp.ne.s32.totalorder %s3292_s18, %s2553_s15  ;;  %s3295_s12 = int_to_ptr.vmem [resolvable:$true] %s649_s12 }
  0xee   : > { %s2558_s16 = scalar_lea.hbm %s3706_s8, 8192  ;;  %p2559_p10 = scmp.lt.u32.totalorder %s3292_s18, %s3706_s8 }
  0xef   : > { %p2556_p7 = pnand %p2554_p12, %p3819_p3  ;;  %p2560_p2 = scmp.lt.u32.totalorder %s2558_s16, %s2553_s15 }
  0xf0   : > { %p2562_p6 = scmp.lt.u32.totalorder %s2553_s15, %s3292_s18 }
  0xf1   : > { %p2557_p9 = pneg %p2556_p7  ;;  %p2561_p1 = por %p2560_p2, %p2559_p10 }
  0xf3   : > { %p2563_p4 = por %p2562_p6, %p2561_p1 }
  0xf5   : > { %p2564_p11 = pnand %p2563_p4, %p2557_p9 }
  0xf7   : > { %2567 = shalt.err (!%p2564_p11)
}
  0xf8   : > { %s2568_s24 = scalar_lea.vmem %s3295_s12, 4096  ;;  %s2821_s1 = smov [#allocation14]  }
  0xf9   : > { %p2569_p13 = scmp.ne.s32.totalorder %s3295_s12, %s2568_s24  ;;  %s2573_s29 = sshll.u32 %s2821_s1, 4  ;;  %s2574_s29 = int_to_ptr.vmem [resolvable:$false] %s2573_s29 }
  0xfa   : > { %s2575_s19 = scalar_lea.vmem %s2574_s29, 8192  ;;  %p2576_p12 = scmp.lt.s32.totalorder %s3295_s12, %s2574_s29 }
  0xfb   : > { %p2571_p0 = pnand %p2569_p13, %p3819_p3  ;;  %p2577_p7 = scmp.lt.s32.totalorder %s2575_s19, %s2568_s24 }
  0xfd   : > { %p2572_p5 = pneg %p2571_p0  ;;  %p2578_p10 = por %p2577_p7, %p2576_p12 }
  0xff   : > { %p2579_p2 = pnand %p2578_p10, %p2572_p5 }
 0x101   : > { %2582 = shalt.err (!%p2579_p2)
}
 0x102   : > { %s3823_s28 = scalar_lea.sflag [#allocation13], %s3046_s11  ;;  %s3327_s15 = scalar_lea.hbm %s3708_s10, %s3131_s17 }
 0x103   : > { %2235 = dma.hbm_to_vmem [thread:$0]  (!%p3820_p8), %s3292_s18, 4096, %s3295_s12, %s3823_s28, %s3821_s22, %s3821_s22, %s2817_s9  }
 0x104   : > { %s669_s30 = scalar_lea.vmem [#allocation15], %s3142_s21  ;;  %s3824_s11 = sand.u32 1, %s2779_s23  }
 0x105   : > { %s676_s25 = sshll.u32 %s669_s30, 4  ;;  %s3334_s16 = scalar_lea.sflag [#allocation16], %s3824_s11  ;;  %s3330_s25 = int_to_ptr.vmem [resolvable:$true] %s676_s25 }
 0x106   : > { %s2583_s14 = scalar_lea.hbm %s3327_s15, 4096  ;;  %s2588_s17 = scalar_lea.hbm %s3708_s10, 8192 }
 0x107   : > { %p2584_p9 = scmp.ne.s32.totalorder %s3327_s15, %s2583_s14  ;;  %p2589_p4 = scmp.lt.u32.totalorder %s3327_s15, %s3708_s10 }
 0x108   : > { %p2590_p11 = scmp.lt.u32.totalorder %s2588_s17, %s2583_s14  ;;  %p2592_p0 = scmp.lt.u32.totalorder %s2583_s14, %s3327_s15 }
 0x109   : > { %p2586_p1 = pnand %p2584_p9, %p3819_p3 }
 0x10a   : > { %p2591_p13 = por %p2590_p11, %p2589_p4 }
 0x10b   : > { %p2587_p6 = pneg %p2586_p1 }
 0x10c   : > { %p2593_p5 = por %p2592_p0, %p2591_p13 }
 0x10e   : > { %p2594_p12 = pnand %p2593_p5, %p2587_p6 }
 0x110   : > { %2597 = shalt.err (!%p2594_p12)
}
 0x111   : > { %s2598_s21 = scalar_lea.vmem %s3330_s25, 4096  ;;  %s2822_s5 = smov [#allocation15]  }
 0x112   : > { %p2599_p7 = scmp.ne.s32.totalorder %s3330_s25, %s2598_s21  ;;  %s2603_s24 = sshll.u32 %s2822_s5, 4  ;;  %s2604_s24 = int_to_ptr.vmem [resolvable:$false] %s2603_s24 }
 0x113   : > { %s2605_s1 = scalar_lea.vmem %s2604_s24, 8192  ;;  %p2606_p9 = scmp.lt.s32.totalorder %s3330_s25, %s2604_s24 }
 0x114   : > { %p2601_p10 = pnand %p2599_p7, %p3819_p3  ;;  %p2607_p1 = scmp.lt.s32.totalorder %s2605_s1, %s2598_s21 }
 0x116   : > { %p2602_p2 = pneg %p2601_p10  ;;  %p2608_p4 = por %p2607_p1, %p2606_p9 }
 0x118   : > { %p2609_p11 = pnand %p2608_p4, %p2602_p2 }
 0x11a   : > { %2612 = shalt.err (!%p2609_p11)
}
 0x11b   : > { %s2823_s29 = smov 256   ;;  %s2824_s19 = smov 16  }
 0x11c   : > { %2238 = dma.hbm_to_vmem [thread:$0]  (!%p3820_p8), %s3327_s15, 4096, %s3330_s25, %s3334_s16, %s2823_s29, %s2823_s29, %s2824_s19  }
 0x11d   : > { %s3825_s3 = sld [smem:[#allocation45_spill]] }
 0x123   : > { %p3826_p3 = scmp.ne.s32.totalorder %s3825_s3, 0 }
 0x124   : > { %s3827_s28 = sld [smem:[#allocation32_spill]] (!%p3826_p3)  ;;  %s3828_s13 = sld [smem:[#allocation39_spill]] (!%p3826_p3) }
 0x125   : > { %688 = sbr.rel (%p3826_p3) target bundleno = 1958 (0x7a6), region = 76 }
 0x12a   : > { %s3361_s6 = sand.u32 (!%p3826_p3), 1, %s3827_s28   ;;  %p3829_p6 = scmp.ne.s32.totalorder (!%p3826_p3), %s3828_s13, 0 }
 0x12b   : > { %s3364_s30 = sshll.u32 (!%p3826_p3), %s3361_s6, 4  ;;  %s691_s11 = scalar_lea.sflag (!%p3826_p3), [#allocation4], %s3361_s6 }
 0x12c   : > { %s694_s14 = scalar_lea.vmem [#allocation3], %s3364_s30 }
 0x12d   : > { %2726 = dma.done.wait (%p3829_p6), %s691_s11, 256  }
 0x12e   : > { %2728 = vsyncadd (%p3829_p6), %s691_s11, 4294967040  ;;  %s3830_s7 = sld [smem:[#allocation38_spill]]  ;;  %s703_s16 = scalar_lea.vmem [#allocation6], %s3364_s30 }
 0x134   : > { %s699_s15 = sand.u32 1, %s3830_s7  }
 0x135   : > { %s700_s25 = scalar_lea.sflag [#allocation7], %s699_s15 }
 0x136   : > { %2730 = dma.done.wait (%p3829_p6), %s700_s25, 512  }
 0x137   : > { %2732 = vsyncadd (%p3829_p6), %s700_s25, 4294966784  ;;  %s712_s9 = scalar_lea.vmem [#allocation8], %s3364_s30  ;;  %s718_s22 = scalar_lea.sflag [#allocation10], %s699_s15 }
 0x138   : > { %s721_s17 = scalar_lea.vmem [#allocation9], %s3364_s30 }
 0x139   : > { %2734 = dma.done.wait (%p3829_p6), %s718_s22, 256  }
 0x13a   : > { %2736 = vsyncadd (%p3829_p6), %s718_s22, 4294967040  ;;  %s3831_s18 = sld [smem:[#allocation30_spill]]  ;;  %s3832_s12 = sld [smem:[#allocation40_spill]] }
 0x140   : > { %s728_s21 = sand.u32 1, %s3831_s18   ;;  %p3833_p8 = scmp.ne.s32.totalorder %s3832_s12, 0 }
 0x141   : > { %s1918_s5 = sshll.u32 %s728_s21, 8 }
 0x142   : > { %s3385_s24 = scalar_lea.vmem [#allocation11], %s1918_s5 }
 0x143   : > { %2738 = dma.done.wait (%p3833_p8), %s718_s22, 4096  }
 0x144   : > { %2740 = vsyncadd (%p3833_p8), %s718_s22, 4294963200  ;;  %s736_s1 = scalar_lea.sflag [#allocation13], %s699_s15  ;;  %s3391_s29 = scalar_lea.vmem [#allocation12], %s1918_s5 }
 0x145   : > { %2742 = dma.done.wait (%p3833_p8), %s736_s1, 8192  }
 0x146   : > { %2744 = vsyncadd (%p3833_p8), %s736_s1, 4294959104  ;;  %s3397_s19 = scalar_lea.vmem [#allocation14], %s1918_s5  ;;  %s754_s3 = scalar_lea.sflag [#allocation16], %s728_s21 }
 0x147   : > { %s3399_s28 = scalar_lea.vmem [#allocation15], %s1918_s5 }
 0x148   : > { %2746 = dma.done.wait (%p3833_p8), %s754_s3, 4096  }
 0x149   : > { %2748 = vsyncadd (%p3833_p8), %s754_s3, 4294963200  ;;  %v993_v0 = vld [vmem:[%s3391_s29 + $0x80] sm:$0xff]  ;;  %v994_v1 = vld [vmem:[%s3391_s29 + $0x88] sm:$0xff]  ;;  %s3834_s13 = sld [smem:[#allocation33_spill]]  ;;  %vm2826_vm0 = vmmov 0   ;;  %s3835_s15 = sld [smem:[#allocation54_spill]] }
 0x14a   : > { %v977_v2 = vld [vmem:[%s3391_s29] sm:$0xff]  ;;  %v2098_v3 = vpack.c.bf16 %v994_v1, %v993_v0  ;;  %v978_v4 = vld [vmem:[%s3391_s29 + $0x8] sm:$0xff]  ;;  %v995_v11 = vld [vmem:[%s3391_s29 + $0x90] sm:$0xff]  ;;  %s3836_s18 = sld [smem:[#allocation52_spill]]  ;;  %s3837_s5 = sld [smem:[#allocation55_spill]]  ;;  %vm1265_vm1 = vcmask 64512  }
 0x14b   : > { %v884_v5 = vld [vmem:[%s3385_s24 + $0x80] sm:$0xff]  ;;  %v885_v6 = vld [vmem:[%s3385_s24 + $0x88] sm:$0xff]  ;;  %v2100_v7 = vpack.c.bf16 %v978_v4, %v977_v2  ;;  %v996_v13 = vld [vmem:[%s3391_s29 + $0x98] sm:$0xff]  ;;  %s3838_s1 = sld [smem:[#allocation29_spill]] }
 0x14c   : > { %v2066_v8 = vpack.c.bf16 %v885_v6, %v884_v5  ;;  %v868_v9 = vld [vmem:[%s3385_s24] sm:$0xff]  ;;  %v869_v10 = vld [vmem:[%s3385_s24 + $0x8] sm:$0xff]  ;;  %2099 = vmatprep.subr.bf16.mxu1 %v2098_v3  ;;  %v979_v14 = vld [vmem:[%s3391_s29 + $0x10] sm:$0xff]  ;;  %v2102_v16 = vpack.c.bf16 %v996_v13, %v995_v11 }
 0x14d   : > { %v2068_v12 = vpack.c.bf16 %v869_v10, %v868_v9  ;;  %v980_v15 = vld [vmem:[%s3391_s29 + $0x18] sm:$0xff]  ;;  %2101 = vmatpush3.bf16.msra.mxu1 %v2100_v7  ;;  %v886_v18 = vld [vmem:[%s3385_s24 + $0x90] sm:$0xff]  ;;  %v997_v23 = vld [vmem:[%s3391_s29 + $0xa0] sm:$0xff] }
 0x14e   : > { %2067 = vmatprep.subr.bf16.mxu0 %v2066_v8  ;;  %v2104_v17 = vpack.c.bf16 %v980_v15, %v979_v14  ;;  %v887_v19 = vld [vmem:[%s3385_s24 + $0x98] sm:$0xff]  ;;  %v870_v20 = vld [vmem:[%s3385_s24 + $0x10] sm:$0xff]  ;;  %v998_v24 = vld [vmem:[%s3391_s29 + $0xa8] sm:$0xff]  ;;  %2103 = vmatprep.subr.bf16.mxu1 %v2102_v16 }
 0x14f   : > { %2069 = vmatpush3.bf16.msra.mxu0 %v2068_v12  ;;  %v2070_v21 = vpack.c.bf16 %v887_v19, %v886_v18  ;;  %v871_v22 = vld [vmem:[%s3385_s24 + $0x18] sm:$0xff]  ;;  %v2106_v26 = vpack.c.bf16 %v998_v24, %v997_v23  ;;  %v981_v27 = vld [vmem:[%s3391_s29 + $0x20] sm:$0xff]  ;;  %v982_v28 = vld [vmem:[%s3391_s29 + $0x28] sm:$0xff]  ;;  %p853_p13 = scmp.lt.s32.totalorder %s3834_s13, 1  ;;  %p1928_p0 = scmp.ne.s32.totalorder %s3834_s13, 0 }
 0x150   : > { %v2072_v25 = vpack.c.bf16 %v871_v22, %v870_v20  ;;  %v888_v29 = vld [vmem:[%s3385_s24 + $0xa0] sm:$0xff]  ;;  %v889_v30 = vld [vmem:[%s3385_s24 + $0xa8] sm:$0xff]  ;;  %v2108_v33 = vpack.c.bf16 %v982_v28, %v981_v27  ;;  %v999_v35 = vld [vmem:[%s3391_s29 + $0xb0] sm:$0xff] }
 0x151   : > { %2071 = vmatprep.subr.bf16.mxu0 %v2070_v21  ;;  %v872_v31 = vld [vmem:[%s3385_s24 + $0x20] sm:$0xff]  ;;  %v873_v32 = vld [vmem:[%s3385_s24 + $0x28] sm:$0xff]  ;;  %2105 = vmatpush3.bf16.msra.mxu1 %v2104_v17  ;;  %v2074_v34 = vpack.c.bf16 %v889_v30, %v888_v29  ;;  %v1000_v36 = vld [vmem:[%s3391_s29 + $0xb8] sm:$0xff]  ;;  %s854_s11 = scalar_select %p853_p13, %s3834_s13, 1 }
 0x152   : > { %v983_v37 = vld [vmem:[%s3391_s29 + $0x30] sm:$0xff]  ;;  %2107 = vmatprep.subr.bf16.mxu1 %v2106_v26  ;;  %v2076_v38 = vpack.c.bf16 %v873_v32, %v872_v31  ;;  %v2110_v39 = vpack.c.bf16 %v1000_v36, %v999_v35  ;;  %v984_v40 = vld [vmem:[%s3391_s29 + $0x38] sm:$0xff]  ;;  %v1001_v46 = vld [vmem:[%s3391_s29 + $0xc0] sm:$0xff] }
 0x153   : > { %2073 = vmatpush3.bf16.msra.mxu0 %v2072_v25  ;;  %v890_v41 = vld [vmem:[%s3385_s24 + $0xb0] sm:$0xff]  ;;  %v891_v42 = vld [vmem:[%s3385_s24 + $0xb8] sm:$0xff]  ;;  %v1002_v47 = vld [vmem:[%s3391_s29 + $0xc8] sm:$0xff]  ;;  %v2112_v48 = vpack.c.bf16 %v984_v40, %v983_v37  ;;  %s858_s25 = scalar_lea.vmem %s3835_s15, %s854_s11  ;;  %s855_s12 = scalar_lea.vmem %s3836_s18, %s854_s11 }
 0x154   : > { %2075 = vmatprep.subr.bf16.mxu0 %v2074_v34  ;;  %v2078_v43 = vpack.c.bf16 %v891_v42, %v890_v41  ;;  %v874_v44 = vld [vmem:[%s3385_s24 + $0x30] sm:$0xff]  ;;  %v875_v45 = vld [vmem:[%s3385_s24 + $0x38] sm:$0xff]  ;;  %v892_v49 = vld [vmem:[%s3385_s24 + $0xc0] sm:$0xff]  ;;  %v2114_v52 = vpack.c.bf16 %v1002_v47, %v1001_v46 }
 0x155   : > { %2109 = vmatpush3.bf16.msra.mxu1 %v2108_v33  ;;  %v893_v50 = vld [vmem:[%s3385_s24 + $0xc8] sm:$0xff]  ;;  %v2080_v51 = vpack.c.bf16 %v875_v45, %v874_v44  ;;  %v985_v53 = vld [vmem:[%s3391_s29 + $0x40] sm:$0xff]  ;;  %v1003_v58 = vld [vmem:[%s3391_s29 + $0xd0] sm:$0xff] }
 0x156   : > { %2111 = vmatprep.subr.bf16.mxu1 %v2110_v39  ;;  %v986_v54 = vld [vmem:[%s3391_s29 + $0x48] sm:$0xff]  ;;  %v876_v55 = vld [vmem:[%s3385_s24 + $0x40] sm:$0xff]  ;;  %v2082_v56 = vpack.c.bf16 %v893_v50, %v892_v49  ;;  %v1004_v59 = vld [vmem:[%s3391_s29 + $0xd8] sm:$0xff] }
 0x157   : > { %2077 = vmatpush3.bf16.msra.mxu0 %v2076_v38  ;;  %v877_v57 = vld [vmem:[%s3385_s24 + $0x48] sm:$0xff]  ;;  %v894_v60 = vld [vmem:[%s3385_s24 + $0xd0] sm:$0xff]  ;;  %v895_v61 = vld [vmem:[%s3385_s24 + $0xd8] sm:$0xff]  ;;  %v2116_v62 = vpack.c.bf16 %v986_v54, %v985_v53  ;;  %v2118_v0 = vpack.c.bf16 %v1004_v59, %v1003_v58 }
 0x158   : > { %2079 = vmatprep.subr.bf16.mxu0 %v2078_v43  ;;  %v2084_v63 = vpack.c.bf16 %v877_v57, %v876_v55  ;;  %v987_v1 = vld [vmem:[%s3391_s29 + $0x50] sm:$0xff]  ;;  %v988_v2 = vld [vmem:[%s3391_s29 + $0x58] sm:$0xff]  ;;  %v2086_v4 = vpack.c.bf16 %v895_v61, %v894_v60  ;;  %v1005_v6 = vld [vmem:[%s3391_s29 + $0xe0] sm:$0xff] }
 0x159   : > { %2113 = vmatpush3.bf16.msra.mxu1 %v2112_v48  ;;  %v878_v3 = vld [vmem:[%s3385_s24 + $0x50] sm:$0xff]  ;;  %v879_v5 = vld [vmem:[%s3385_s24 + $0x58] sm:$0xff]  ;;  %v1006_v7 = vld [vmem:[%s3391_s29 + $0xe8] sm:$0xff]  ;;  %v2120_v10 = vpack.c.bf16 %v988_v2, %v987_v1 }
 0x15a   : > { %2115 = vmatprep.subr.bf16.mxu1 %v2114_v52  ;;  %v896_v8 = vld [vmem:[%s3385_s24 + $0xe0] sm:$0xff]  ;;  %v897_v9 = vld [vmem:[%s3385_s24 + $0xe8] sm:$0xff]  ;;  %v2088_v13 = vpack.c.bf16 %v879_v5, %v878_v3  ;;  %v2122_v14 = vpack.c.bf16 %v1006_v7, %v1005_v6  ;;  %v1007_v19 = vld [vmem:[%s3391_s29 + $0xf0] sm:$0xff] }
 0x15b   : > { %2081 = vmatpush3.bf16.msra.mxu0 %v2080_v51  ;;  %v989_v11 = vld [vmem:[%s3391_s29 + $0x60] sm:$0xff]  ;;  %v865_v12 = vld [vmem:[%s703_s16 + $0x8] sm:$0xff]  ;;  %v2090_v18 = vpack.c.bf16 %v897_v9, %v896_v8  ;;  %v898_v22 = vld [vmem:[%s3385_s24 + $0xf0] sm:$0xff] }
 0x15c   : > { %2083 = vmatprep.subr.bf16.mxu0 %v2082_v56  ;;  %v990_v15 = vld [vmem:[%s3391_s29 + $0x68] sm:$0xff]  ;;  %v880_v16 = vld [vmem:[%s3385_s24 + $0x60] sm:$0xff]  ;;  %v1008_v20 = vld [vmem:[%s3391_s29 + $0xf8] sm:$0xff]  ;;  %1080 = vmatprep.mubr.f32.mxu1 %v865_v12 }
 0x15d   : > { %2117 = vmatpush3.bf16.msra.mxu1 %v2116_v62  ;;  %v881_v17 = vld [vmem:[%s3385_s24 + $0x68] sm:$0xff]  ;;  %v899_v23 = vld [vmem:[%s3385_s24 + $0xf8] sm:$0xff]  ;;  %v2124_v24 = vpack.c.bf16 %v990_v15, %v989_v11  ;;  %v2126_v26 = vpack.c.bf16 %v1008_v20, %v1007_v19  ;;  %v991_v27 = vld [vmem:[%s3391_s29 + $0x70] sm:$0xff] }
 0x15e   : > { %2119 = vmatprep.subr.bf16.mxu1 %v2118_v0  ;;  %v863_v21 = vld [vmem:[%s694_s14 + $0x8] sm:$0xff]  ;;  %v2092_v25 = vpack.c.bf16 %v881_v17, %v880_v16  ;;  %v2094_v29 = vpack.c.bf16 %v899_v23, %v898_v22  ;;  %v882_v30 = vld [vmem:[%s3385_s24 + $0x70] sm:$0xff]  ;;  %v1102_v32 = vld [vmem:[%s3397_s19 + $0x80] sm:$0xff]  ;;  %v2825_v22 = vmov 0.0  }
 0x15f   : > { %2085 = vmatpush3.bf16.msra.mxu0 %v2084_v63  ;;  %971 = vmatprep.mubr.f32.mxu0 %v863_v21  ;;  %v992_v28 = vld [vmem:[%s3391_s29 + $0x78] sm:$0xff]  ;;  %v1103_v33 = vld [vmem:[%s3397_s19 + $0x88] sm:$0xff]  ;;  %v1086_v37 = vld [vmem:[%s3397_s19] sm:$0xff]  ;;  %s850_s29 = sand.u32 1, %s3838_s1  }
 0x160   : > { %2087 = vmatprep.subr.bf16.mxu0 %v2086_v4  ;;  %v883_v31 = vld [vmem:[%s3385_s24 + $0x78] sm:$0xff]  ;;  %v2128_v34 = vpack.c.bf16 %v992_v28, %v991_v27  ;;  %v2130_v36 = vpack.c.bf16 %v1103_v33, %v1102_v32  ;;  %v1087_v38 = vld [vmem:[%s3397_s19 + $0x8] sm:$0xff]  ;;  %v1104_v39 = vld [vmem:[%s3397_s19 + $0x90] sm:$0xff]  ;;  %s861_s24 = scalar_lea.vmem %s3837_s5, %s854_s11  ;;  %s3539_s11 = scalar_lea.vmem [#allocation17], %s3364_s30 }
 0x161   : > { %2121 = vmatpush3.bf16.msra.mxu1 %v2120_v10  ;;  %v2096_v35 = vpack.c.bf16 %v883_v31, %v882_v30  ;;  %v1105_v40 = vld [vmem:[%s3397_s19 + $0x98] sm:$0xff]  ;;  %v864_v41 = vld [vmem:[%s703_s16] sm:$0xff]  ;;  %v2132_v43 = vpack.c.bf16 %v1087_v38, %v1086_v37  ;;  %v1107_v48 = vld [vmem:[%s3397_s19 + $0xa8] sm:$0xff] }
 0x162   : > { %2123 = vmatprep.subr.bf16.mxu1 %v2122_v14  ;;  %v862_v42 = vld [vmem:[%s694_s14] sm:$0xff]  ;;  %v2134_v44 = vpack.c.bf16 %v1105_v40, %v1104_v39  ;;  %v1089_v46 = vld [vmem:[%s3397_s19 + $0x18] sm:$0xff]  ;;  %v1091_v52 = vld [vmem:[%s3397_s19 + $0x28] sm:$0xff] }
 0x163   : > { %2089 = vmatpush3.bf16.msra.mxu0 %v2088_v13  ;;  %v1088_v45 = vld [vmem:[%s3397_s19 + $0x10] sm:$0xff]  ;;  %v1106_v47 = vld [vmem:[%s3397_s19 + $0xa0] sm:$0xff]  ;;  %v1109_v54 = vld [vmem:[%s3397_s19 + $0xb8] sm:$0xff] }
 0x164   : > { %2091 = vmatprep.subr.bf16.mxu0 %v2090_v18  ;;  %v2136_v49 = vpack.c.bf16 %v1089_v46, %v1088_v45  ;;  %v2138_v50 = vpack.c.bf16 %v1107_v48, %v1106_v47  ;;  %v1090_v51 = vld [vmem:[%s3397_s19 + $0x20] sm:$0xff]  ;;  %v1108_v53 = vld [vmem:[%s3397_s19 + $0xb0] sm:$0xff]  ;;  %v1093_v58 = vld [vmem:[%s3397_s19 + $0x38] sm:$0xff] }
 0x165   : > { %2125 = vmatpush3.bf16.msra.mxu1 %v2124_v24  ;;  %v2140_v55 = vpack.c.bf16 %v1091_v52, %v1090_v51  ;;  %v2142_v56 = vpack.c.bf16 %v1109_v54, %v1108_v53  ;;  %v1092_v57 = vld [vmem:[%s3397_s19 + $0x30] sm:$0xff]  ;;  %v1110_v59 = vld [vmem:[%s3397_s19 + $0xc0] sm:$0xff]  ;;  %v1111_v60 = vld [vmem:[%s3397_s19 + $0xc8] sm:$0xff]  ;;  %v2827_v51 = vmov (!%p1928_p0), 0.0  }
 0x166   : > { %2127 = vmatprep.subr.bf16.mxu1 %v2126_v26  ;;  %v2144_v61 = vpack.c.bf16 %v1093_v58, %v1092_v57  ;;  %v2146_v62 = vpack.c.bf16 %v1111_v60, %v1110_v59  ;;  %v1094_v63 = vld [vmem:[%s3397_s19 + $0x40] sm:$0xff]  ;;  %v1095_v0 = vld [vmem:[%s3397_s19 + $0x48] sm:$0xff]  ;;  %v1112_v1 = vld [vmem:[%s3397_s19 + $0xd0] sm:$0xff]  ;;  %1356 = vst [vmem:[#allocation2] sm:$0xff] (!%p1928_p0), %v2827_v51 }
 0x167   : > { %2093 = vmatpush3.bf16.msra.mxu0 %v2092_v25  ;;  %v1113_v2 = vld [vmem:[%s3397_s19 + $0xd8] sm:$0xff]  ;;  %v2148_v3 = vpack.c.bf16 %v1095_v0, %v1094_v63  ;;  %v1096_v5 = vld [vmem:[%s3397_s19 + $0x50] sm:$0xff]  ;;  %v1114_v7 = vld [vmem:[%s3397_s19 + $0xe0] sm:$0xff]  ;;  %1357 = vst [vmem:[#allocation2 + $0x8] sm:$0xff] (!%p1928_p0), %v2827_v51 }
 0x168   : > { %2095 = vmatprep.subr.bf16.mxu0 %v2094_v29  ;;  %v2150_v4 = vpack.c.bf16 %v1113_v2, %v1112_v1  ;;  %v1097_v6 = vld [vmem:[%s3397_s19 + $0x58] sm:$0xff]  ;;  %v1115_v8 = vld [vmem:[%s3397_s19 + $0xe8] sm:$0xff]  ;;  %v1098_v11 = vld [vmem:[%s3397_s19 + $0x60] sm:$0xff] }
 0x169   : > { %2129 = vmatpush3.bf16.msra.mxu1 %v2128_v34  ;;  %v2152_v9 = vpack.c.bf16 %v1097_v6, %v1096_v5  ;;  %v2154_v10 = vpack.c.bf16 %v1115_v8, %v1114_v7  ;;  %v1099_v12 = vld [vmem:[%s3397_s19 + $0x68] sm:$0xff]  ;;  %v1116_v13 = vld [vmem:[%s3397_s19 + $0xf0] sm:$0xff]  ;;  %v1117_v14 = vld [vmem:[%s3397_s19 + $0xf8] sm:$0xff] }
 0x16a   : > { %v2156_v15 = vpack.c.bf16 %v1099_v12, %v1098_v11  ;;  %v2158_v16 = vpack.c.bf16 %v1117_v14, %v1116_v13  ;;  %v1100_v17 = vld [vmem:[%s3397_s19 + $0x70] sm:$0xff]  ;;  %v1101_v18 = vld [vmem:[%s3397_s19 + $0x78] sm:$0xff]  ;;  %2061 = vmatprep.subr.mxu1 %v2825_v22  ;;  %s3529_s19 = sshll.u32 %s850_s29, 3 }
 0x16b   : > { %2097 = vmatpush3.bf16.msra.mxu0 %v2096_v35  ;;  %v2160_v19 = vpack.c.bf16 %v1101_v18, %v1100_v17  ;;  %v867_v20 = vld [vmem:[%s712_s9 + $0x8] sm:$0xff]  ;;  %v866_v21 = vld [vmem:[%s712_s9] sm:$0xff]  ;;  %s852_s3 = scalar_lea.vmem [#allocation18], %s3529_s19 }
 0x16c   : > { %2131 = vmatprep.subr.bf16.mxu0 %v2130_v36  ;;  %1081 = vmatmul.mubr.f32.vlgmr.msra.gmra.mrb[0].mxu1 %v864_v41  ;;  %v1925_v24 = vld [vmem:[%s858_s25] ss:$0 sm:$0xff] }
 0x16d   : > { %2063 = vmatprep.mubr.msk.f32.mxu1 %vm2826_vm0, %v2825_v22  ;;  %v1924_v28 = vld [vmem:[%s855_s12] ss:$0 sm:$0xff] }
 0x16e   : > { %972 = vmatmul.mubr.f32.vlgmr.msra.gmra.mrb[0].mxu0 %v862_v42  ;;  %v1926_v34 = vld [vmem:[%s861_s24] ss:$0 sm:$0xff] }
 0x16f   : > { %2133 = vmatpush3.bf16.msra.mxu0 %v2132_v43  ;;  %1189 = vmatprep.mubr.f32.mxu0 %v867_v20 }
 0x170   : > { %2135 = vmatprep.subr.bf16.mxu0 %v2134_v44 }
 0x173   : > { %2137 = vmatpush3.bf16.msra.mxu0 %v2136_v49 }
 0x174   : > { %2139 = vmatprep.subr.bf16.mxu0 %v2138_v50 }
 0x177   : > { %2141 = vmatpush3.bf16.msra.mxu0 %v2140_v55 }
 0x178   : > { %2143 = vmatprep.subr.bf16.mxu0 %v2142_v56 }
 0x17b   : > { %2145 = vmatpush3.bf16.msra.mxu0 %v2144_v61 }
 0x17c   : > { %2147 = vmatprep.subr.bf16.mxu0 %v2146_v62 }
 0x17f   : > { %2149 = vmatpush3.bf16.msra.mxu0 %v2148_v3 }
 0x180   : > { %2151 = vmatprep.subr.bf16.mxu0 %v2150_v4 }
 0x183   : > { %2153 = vmatpush3.bf16.msra.mxu0 %v2152_v9 }
 0x184   : > { %2155 = vmatprep.subr.bf16.mxu0 %v2154_v10 }
 0x187   : > { %2157 = vmatpush3.bf16.msra.mxu0 %v2156_v15 }
 0x188   : > { %2159 = vmatprep.subr.bf16.mxu0 %v2158_v16 }
 0x18b   : > { %2161 = vmatpush3.bf16.msra.mxu0 %v2160_v19 }
 0x18c   : > { %2056 = vmatprep.subr.mxu0 %v2825_v22 }
 0x18e   : > { %1190 = vmatmul.mubr.f32.vlgmr.msra.gmra.mrb[2].mxu0 %v866_v21 }
 0x18f   : > { %2058 = vmatprep.mubr.msk.f32.mxu0 %vm2826_vm0, %v2825_v22 }
 0x23f   : > { %v2014_v23 = vpop.f32.mrb[0].mxu1 }
 0x240   : > { %v2015_v25 = vpop.f32.mrb[1].mxu1 }
 0x241   : > { %v1979_v26 = vpop.f32.mrb[0].mxu0  ;;  %v2016_v27 = vadd.f32 %v2015_v25, %v2014_v23 }
 0x242   : > { %v1980_v29 = vpop.f32.mrb[1].mxu0 }
 0x243   : > { %v1981_v30 = vadd.f32 %v1980_v29, %v1979_v26  ;;  %v1083_v31 = vadd.f32 %v2016_v27, %v1925_v24 }
 0x245   : > { %v974_v32 = vadd.f32 %v1981_v30, %v1924_v28  ;;  %2057 = vmatpush3.xpose.msra.mxu0 %v1083_v31 }
 0x248   : > { %2059 = vmatmul.mubr.f32.vlgmr.msra.gmra.mrb[4].mxu0 %v974_v32 }
 0x261   : > { %v2049_v33 = vpop.f32.mrb[2].mxu0 }
 0x262   : > { %v2050_v35 = vpop.f32.mrb[3].mxu0 }
 0x263   : > { %v2051_v36 = vadd.f32 %v2050_v35, %v2049_v33 }
 0x265   : > { %v1192_v37 = vadd.f32 %v2051_v36, %v1926_v34 }
 0x267   : > { %2062 = vmatpush3.msra.mxu1 %v1192_v37 }
 0x31b   : > { %v1261_v38 = vpop.f32.mrb[4].mxu0 }
 0x31c   : > { %v2060_v39 = vpop.f32.mrb[5].mxu0  ;;  %v1266_v40 = vsel %vm1265_vm1, %v1261_v38, -inf }
 0x31d   : > { %1267 = vmax.xlane.f32.xlu0 %v1266_v40 }
 0x3aa   : > { %v1268_v41 = vpop.xlane.xlu0 %1267 }
 0x3ab   : > { %v1269_v42 = vsub.f32 %v1261_v38, %v1268_v41 }
 0x3ad   : > { %v1270_v43 = vmul.f32 1.442695, %v1269_v42 }
 0x3af   : > { %2367 = vpow2.f32 %v1270_v43 }
 0x3b9   : > { %v2368_v44 = vpop.eup %2367 }
 0x3ba   : > { %v1272_v45 = vsel %vm1265_vm1, %v2368_v44, 0.0 }
 0x3bb   : > { %1273 = vadd.xlane.f32.xlu0 %v1272_v45 }
 0x448   : > { %v1274_v46 = vpop.xlane.xlu0 %1273 }
 0x449   : > { %2369 = vrcp.f32 %v1274_v46 }
 0x453   : > { %v2370_v47 = vpop.eup %2369 }
 0x454   : > { %v1277_v48 = vmul.f32 %v2370_v47, %v2368_v44 }
 0x456   : > { %1351 = vst.msk [vmem:[%s852_s3] sm:$0xff] %vm1265_vm1, %v1277_v48  ;;  %2064 = vmatmul.mubr.msk.f32.vlgmr.msra.gmra.mrb[2].mxu1 %vm1265_vm1, %v1277_v48 }
 0x524   : > { %1355 = sbr.rel (%p1928_p0) target bundleno = 1323 (0x52b), region = 112 }
 0x529   : > { %v3536_v49 = vpop.f32.mrb[2].mxu1 }
 0x52a   : > { %v2065_v50 = vpop.f32.mrb[3].mxu1 }
 0x52b PF: > { %v1361_v52 = vld [vmem:[%s3399_s28 + $0x8] sm:$0xff]  ;;  %v1363_v53 = vld [vmem:[%s3399_s28 + $0x18] sm:$0xff]  ;;  %v1360_v54 = vld [vmem:[%s3399_s28] sm:$0xff]  ;;  %1456 = vmatprep.mubr.f32.mxu1 %v2825_v22  ;;  %s3839_s13 = sld [smem:[#allocation33_spill]] }
 0x52c   : > { %v2162_v55 = vpack.c.bf16 %v1363_v53, %v1361_v52  ;;  %v1362_v56 = vld [vmem:[%s3399_s28 + $0x10] sm:$0xff]  ;;  %v1365_v57 = vld [vmem:[%s3399_s28 + $0x28] sm:$0xff]  ;;  %v1367_v58 = vld [vmem:[%s3399_s28 + $0x38] sm:$0xff] }
 0x52d   : > { %v2164_v59 = vpack.c.bf16 %v1362_v56, %v1360_v54  ;;  %v2166_v60 = vpack.c.bf16 %v1367_v58, %v1365_v57  ;;  %v1364_v61 = vld [vmem:[%s3399_s28 + $0x20] sm:$0xff]  ;;  %v1366_v62 = vld [vmem:[%s3399_s28 + $0x30] sm:$0xff]  ;;  %v1369_v63 = vld [vmem:[%s3399_s28 + $0x48] sm:$0xff] }
 0x52e   : > { %2163 = vmatprep.subr.bf16.mxu1 %v2162_v55  ;;  %v1371_v0 = vld [vmem:[%s3399_s28 + $0x58] sm:$0xff]  ;;  %v2168_v1 = vpack.c.bf16 %v1366_v62, %v1364_v61  ;;  %v1368_v3 = vld [vmem:[%s3399_s28 + $0x40] sm:$0xff]  ;;  %v1370_v4 = vld [vmem:[%s3399_s28 + $0x50] sm:$0xff] }
 0x52f   : > { %2165 = vmatpush1.bf16.msra.mxu1 %v2164_v59  ;;  %v2170_v2 = vpack.c.bf16 %v1371_v0, %v1369_v63  ;;  %v1373_v5 = vld [vmem:[%s3399_s28 + $0x68] sm:$0xff]  ;;  %v1375_v6 = vld [vmem:[%s3399_s28 + $0x78] sm:$0xff]  ;;  %v2172_v7 = vpack.c.bf16 %v1370_v4, %v1368_v3  ;;  %v1372_v9 = vld [vmem:[%s3399_s28 + $0x60] sm:$0xff] }
 0x530   : > { %2167 = vmatprep.subr.bf16.mxu1 %v2166_v60  ;;  %v2174_v8 = vpack.c.bf16 %v1375_v6, %v1373_v5  ;;  %v1374_v10 = vld [vmem:[%s3399_s28 + $0x70] sm:$0xff]  ;;  %v1377_v11 = vld [vmem:[%s3399_s28 + $0x88] sm:$0xff]  ;;  %v1379_v12 = vld [vmem:[%s3399_s28 + $0x98] sm:$0xff] }
 0x531   : > { %v2176_v13 = vpack.c.bf16 %v1374_v10, %v1372_v9  ;;  %v2178_v14 = vpack.c.bf16 %v1379_v12, %v1377_v11  ;;  %v1376_v15 = vld [vmem:[%s3399_s28 + $0x80] sm:$0xff]  ;;  %v1378_v16 = vld [vmem:[%s3399_s28 + $0x90] sm:$0xff]  ;;  %v1381_v17 = vld [vmem:[%s3399_s28 + $0xa8] sm:$0xff]  ;;  %p1929_p5 = scmp.ne.s32.totalorder %s3839_s13, 1 }
 0x532   : > { %v1383_v18 = vld [vmem:[%s3399_s28 + $0xb8] sm:$0xff]  ;;  %v2180_v19 = vpack.c.bf16 %v1378_v16, %v1376_v15  ;;  %v1380_v21 = vld [vmem:[%s3399_s28 + $0xa0] sm:$0xff]  ;;  %v1382_v22 = vld [vmem:[%s3399_s28 + $0xb0] sm:$0xff]  ;;  %v1475_v42 = vlaneseq (!%p1929_p5)  ;;  %s3840_s7 = sld [smem:[#allocation56_spill]] (!%p1929_p5)  ;;  %s3841_s16 = sld [smem:[#allocation57_spill]] (!%p1929_p5) }
 0x533   : > { %2169 = vmatpush1.bf16.msra.mxu1 %v2168_v1  ;;  %v2182_v20 = vpack.c.bf16 %v1383_v18, %v1381_v17  ;;  %v1385_v23 = vld [vmem:[%s3399_s28 + $0xc8] sm:$0xff]  ;;  %v1387_v24 = vld [vmem:[%s3399_s28 + $0xd8] sm:$0xff]  ;;  %v2184_v25 = vpack.c.bf16 %v1382_v22, %v1380_v21  ;;  %v1384_v27 = vld [vmem:[%s3399_s28 + $0xc0] sm:$0xff]  ;;  %s3842_s12 = sld [smem:[#allocation58_spill]] (!%p1929_p5) }
 0x534   : > { %2171 = vmatprep.subr.bf16.mxu1 %v2170_v2  ;;  %v2186_v26 = vpack.c.bf16 %v1387_v24, %v1385_v23  ;;  %v1386_v28 = vld [vmem:[%s3399_s28 + $0xd0] sm:$0xff]  ;;  %v1389_v29 = vld [vmem:[%s3399_s28 + $0xe8] sm:$0xff]  ;;  %v1391_v30 = vld [vmem:[%s3399_s28 + $0xf8] sm:$0xff]  ;;  %v1476_v43 = vshrl.u32 (!%p1929_p5), %v1475_v42, 7 }
 0x535   : > { %v2188_v31 = vpack.c.bf16 %v1386_v28, %v1384_v27  ;;  %v2190_v32 = vpack.c.bf16 %v1391_v30, %v1389_v29  ;;  %v1388_v33 = vld [vmem:[%s3399_s28 + $0xe0] sm:$0xff]  ;;  %v1390_v34 = vld [vmem:[%s3399_s28 + $0xf0] sm:$0xff]  ;;  %v1359_v37 = vld [vmem:[#allocation2 + $0x8] sm:$0xff] }
 0x536   : > { %v2192_v35 = vpack.c.bf16 %v1390_v34, %v1388_v33  ;;  %v1358_v36 = vld [vmem:[#allocation2] sm:$0xff]  ;;  %v1477_v45 = vsub.s32 (!%p1929_p5), 0, %v1476_v43  ;;  %v1481_v46 = vsub.s32 (!%p1929_p5), 1, %v1476_v43 }
 0x537   : > { %2173 = vmatpush1.bf16.msra.mxu1 %v2172_v7 }
 0x538   : > { %2175 = vmatprep.subr.bf16.mxu1 %v2174_v8  ;;  %v1473_v44 = vld [vmem:[%s3840_s7] sm:$0x3] (!%p1929_p5) }
 0x539   : > { %v1482_v50 = vrot.slane (!%p1929_p5), %v1473_v44, %v1481_v46  ;;  %v1504_v0 = vld [vmem:[%s3841_s16] sm:$0x3] (!%p1929_p5) }
 0x53a   : > { %v1518_v1 = vld [vmem:[%s3842_s12] sm:$0x3] (!%p1929_p5)  ;;  %v1509_v2 = vrot.slane (!%p1929_p5), %v1504_v0, %v1477_v45  ;;  %v1513_v3 = vrot.slane (!%p1929_p5), %v1504_v0, %v1481_v46 }
 0x53b   : > { %2177 = vmatpush1.bf16.msra.mxu1 %v2176_v13  ;;  %v1523_v5 = vrot.slane (!%p1929_p5), %v1518_v1, %v1477_v45  ;;  %v1527_v6 = vrot.slane (!%p1929_p5), %v1518_v1, %v1481_v46  ;;  %v1534_v13 = vld [vmem:[%s721_s17] sm:$0xff] (!%p1929_p5) }
 0x53c   : > { %2179 = vmatprep.subr.bf16.mxu1 %v2178_v14  ;;  %v1535_v14 = vld [vmem:[%s721_s17 + $0x8] sm:$0xff] (!%p1929_p5) }
 0x53f   : > { %2181 = vmatpush1.bf16.msra.mxu1 %v2180_v19 }
 0x540   : > { %2183 = vmatprep.subr.bf16.mxu1 %v2182_v20 }
 0x543   : > { %2185 = vmatpush1.bf16.msra.mxu1 %v2184_v25 }
 0x544   : > { %2187 = vmatprep.subr.bf16.mxu1 %v2186_v26 }
 0x547   : > { %2189 = vmatpush1.bf16.msra.mxu1 %v2188_v31 }
 0x548   : > { %2191 = vmatprep.subr.bf16.mxu1 %v2190_v32 }
 0x54b   : > { %2193 = vmatpush1.bf16.msra.mxu1 %v2192_v35 }
 0x54e   : > { %1457 = vmatmul.mubr.f32.vlgmr.msra.gmra.mrb[4].mxu1 %v3536_v49  ;;  %v1478_v49 = vrot.slane (!%p1929_p5), %v1473_v44, %v1477_v45 }
 0x61f   : > { %1470 = sbr.rel (%p1929_p5) target bundleno = 1903 (0x76f), region = 116 }
 0x621   : > { %v1458_v38 = vpop.f32.mrb[4].mxu1 }
 0x622   : > { %v1463_v39 = vadd.f32 %v1458_v38, %v1358_v36  ;;  %v1460_v40 = vpop.f32.mrb[5].mxu1 }
 0x623   : > { %v1464_v41 = vadd.f32 %v1460_v40, %v1359_v37 }
 0x624   : > { %1465 = vst [vmem:[#allocation2] sm:$0xff] %v1463_v39 }
 0x625   : > { %1466 = vst [vmem:[#allocation2 + $0x8] sm:$0xff] %v1464_v41 }
 0x62b   : > { %v1471_v47 = vld [vmem:[#allocation2] sm:$0xff] }
 0x62c   : > { %v1472_v48 = vld [vmem:[#allocation2 + $0x8] sm:$0xff]  ;;  %v1485_v51 = vadd.f32 %v1478_v49, %v1471_v47 }
 0x62d   : > { %v1486_v52 = vadd.f32 %v1482_v50, %v1472_v48 }
 0x62f   : > { %v1487_v53 = vadd.f32 %v1486_v52, %v1485_v51 }
 0x631   : > { %1488 = vadd.xlane.f32.xlu0 %v1487_v53 }
 0x6be   : > { %v1489_v54 = vpop.xlane.xlu0 %1488 }
 0x6bf   : > { %v1491_v55 = vmul.f32 0.00390625, %v1489_v54 }
 0x6c1   : > { %v1492_v56 = vsub.f32 %v1485_v51, %v1491_v55  ;;  %v1493_v57 = vsub.f32 %v1486_v52, %v1491_v55 }
 0x6c3   : > { %v1494_v58 = vmul.f32 %v1492_v56, %v1492_v56  ;;  %v1495_v59 = vmul.f32 %v1493_v57, %v1493_v57 }
 0x6c5   : > { %v1496_v60 = vadd.f32 %v1495_v59, %v1494_v58 }
 0x6c7   : > { %1497 = vadd.xlane.f32.xlu0 %v1496_v60 }
 0x754   : > { %v1498_v61 = vpop.xlane.xlu0 %1497 }
 0x755   : > { %v1499_v62 = vmul.f32 0.00390625, %v1498_v61 }
 0x757   : > { %v1500_v63 = vadd.f32 1e-05, %v1499_v62 }
 0x759   : > { %2371 = vrsqrt.f32 %v1500_v63 }
 0x763   : > { %v2372_v4 = vpop.eup %2371 }
 0x764   : > { %v1502_v7 = vmul.f32 %v2372_v4, %v1492_v56  ;;  %v1503_v8 = vmul.f32 %v2372_v4, %v1493_v57 }
 0x766   : > { %v1516_v9 = vmul.f32 %v1509_v2, %v1502_v7  ;;  %v1517_v10 = vmul.f32 %v1513_v3, %v1503_v8 }
 0x768   : > { %v1530_v11 = vadd.f32 %v1523_v5, %v1516_v9  ;;  %v1531_v12 = vadd.f32 %v1527_v6, %v1517_v10 }
 0x76a   : > { %v1532_v15 = vmax.f32 %v1530_v11, 0.0  ;;  %v1533_v16 = vmax.f32 %v1531_v12, 0.0 }
 0x76c   : > { %v1536_v17 = vadd.f32 %v1534_v13, %v1532_v15  ;;  %v1537_v18 = vadd.f32 %v1535_v14, %v1533_v16 }
 0x76e   : > { %1538 = vst [vmem:[%s3539_s11] sm:$0xff] %v1536_v17  ;;  %1539 = vst [vmem:[%s3539_s11 + $0x8] sm:$0xff] %v1537_v18 }
 0x76f PF: > { %s3843_s9 = sld [smem:[#allocation34_spill]]  ;;  %s3844_s21 = sld [smem:[#allocation41_spill]] }
 0x770   : > { %s3845_s13 = sld [smem:[#allocation59_spill]]  ;;  %s1562_s14 = sshll.u32 %s3539_s11, 4  ;;  %s1563_s14 = int_to_ptr.vmem [resolvable:$true] %s1562_s14 }
 0x771   : > { %s1541_s30 = scalar_lea.sflag [#allocation5], %s3361_s6  ;;  %s2613_s17 = scalar_lea.vmem %s1563_s14, 256 }
 0x772   : > { %p2614_p12 = scmp.ne.s32.totalorder %s1563_s14, %s2613_s17  ;;  %s2828_s7 = smov [#allocation17]  }
 0x773   : > { %s2617_s15 = sshll.u32 %s2828_s7, 4  ;;  %s2618_s15 = int_to_ptr.vmem [resolvable:$false] %s2617_s15 }
 0x774   : > { %s2619_s25 = scalar_lea.vmem %s2618_s15, 512  ;;  %p2620_p9 = scmp.lt.s32.totalorder %s1563_s14, %s2618_s15 }
 0x775   : > { %s1946_s5 = sshll.u32 %s3843_s9, 8  ;;  %p3846_p7 = scmp.ne.s32.totalorder %s3844_s21, 0 }
 0x776   : > { %s3595_s28 = scalar_lea.hbm %s3845_s13, %s1946_s5  ;;  %p2621_p1 = scmp.lt.s32.totalorder %s2619_s25, %s2613_s17 }
 0x777   : > { %p2615_p10 = pnand %p2614_p12, %p3846_p7 }
 0x778   : > { %p2622_p4 = por %p2621_p1, %p2620_p9 }
 0x779   : > { %p2616_p2 = pneg %p2615_p10 }
 0x77b   : > { %p2623_p11 = pnand %p2622_p4, %p2616_p2 }
 0x77d   : > { %2626 = shalt.err (!%p2623_p11)
}
 0x77e   : > { %s2627_s6 = scalar_lea.hbm %s3595_s28, 256  ;;  %s2631_s22 = scalar_lea.hbm %s3845_s13, 512 }
 0x77f   : > { %p2628_p3 = scmp.ne.s32.totalorder %s3595_s28, %s2627_s6  ;;  %p2632_p13 = scmp.lt.u32.totalorder %s3595_s28, %s3845_s13 }
 0x780   : > { %p2633_p0 = scmp.lt.u32.totalorder %s2631_s22, %s2627_s6  ;;  %p2635_p12 = scmp.lt.u32.totalorder %s2627_s6, %s3595_s28 }
 0x781   : > { %p2629_p6 = pnand %p2628_p3, %p3846_p7 }
 0x782   : > { %p2634_p5 = por %p2633_p0, %p2632_p13 }
 0x783   : > { %p2630_p8 = pneg %p2629_p6 }
 0x784   : > { %p2636_p10 = por %p2635_p12, %p2634_p5 }
 0x786   : > { %p2637_p2 = pnand %p2636_p10, %p2630_p8 }
 0x788   : > { %2640 = shalt.err (!%p2637_p2)
}
 0x789   : > { %s3847_s5 = sld [smem:[#allocation33_spill]]  ;;  %s1934_s17 = sshll.u32 %s3843_s9, 1 }
 0x78a   : > { %s3849_s1 = sld [smem:[#allocation43_spill]]  ;;  %s1578_s7 = sshll.u32 %s852_s3, 4  ;;  %s3620_s7 = int_to_ptr.vmem [resolvable:$true] %s1578_s7 }
 0x78b   : > { %2210 = dma.vmem_to_hbm [thread:$0]  (%p3846_p7), %s1563_s14, 256, %s3595_s28, %s1541_s30  }
 0x78c   : > { %s3850_s21 = sld [smem:[#allocation60_spill]]  ;;  %s1546_s22 = scalar_lea.sflag [#allocation19], %s850_s29 }
 0x78d   : > { %s2641_s18 = scalar_lea.vmem %s3620_s7, 128  ;;  %s2829_s19 = smov [#allocation18]  }
 0x78e   : > { %p2642_p9 = scmp.ne.s32.totalorder %s3620_s7, %s2641_s18  ;;  %s2645_s3 = sshll.u32 %s2829_s19, 4  ;;  %s2646_s3 = int_to_ptr.vmem [resolvable:$false] %s2645_s3 }
 0x78f   : > { %s1574_s15 = sadd.s32 %s3847_s5, %s1934_s17  ;;  %s2647_s9 = scalar_lea.vmem %s2646_s3, 256 }
 0x790   : > { %s1935_s25 = sshll.u32 %s1574_s15, 7  ;;  %p3852_p1 = scmp.ne.s32.totalorder %s3849_s1, 0 }
 0x791   : > { %p2648_p11 = scmp.lt.s32.totalorder %s3620_s7, %s2646_s3  ;;  %p2649_p3 = scmp.lt.s32.totalorder %s2647_s9, %s2641_s18 }
 0x792   : > { %s3851_s12 = smov %s3850_s21  ;;  %s1576_s16 = scalar_lea.hbm %s3850_s21, %s1935_s25 }
 0x793   : > { %p2643_p7 = pnand %p2642_p9, %p3852_p1  ;;  %p2650_p6 = por %p2649_p3, %p2648_p11 }
 0x795   : > { %p2644_p4 = pneg %p2643_p7 }
 0x797   : > { %p2651_p8 = pnand %p2650_p6, %p2644_p4 }
 0x799   : > { %2654 = shalt.err (!%p2651_p8)
}
 0x79a   : > { %s2655_s28 = scalar_lea.hbm %s1576_s16, 128  ;;  %s2659_s30 = scalar_lea.hbm %s3851_s12, 512 }
 0x79b   : > { %p2656_p13 = scmp.ne.s32.totalorder %s1576_s16, %s2655_s28  ;;  %p2660_p12 = scmp.lt.u32.totalorder %s1576_s16, %s3851_s12 }
 0x79c   : > { %p2661_p10 = scmp.lt.u32.totalorder %s2659_s30, %s2655_s28  ;;  %p2663_p9 = scmp.lt.u32.totalorder %s2655_s28, %s1576_s16 }
 0x79d   : > { %p2657_p0 = pnand %p2656_p13, %p3852_p1 }
 0x79e   : > { %p2662_p2 = por %p2661_p10, %p2660_p12 }
 0x79f   : > { %p2658_p5 = pneg %p2657_p0 }
 0x7a0   : > { %p2664_p7 = por %p2663_p9, %p2662_p2 }
 0x7a2   : > { %p2665_p4 = pnand %p2664_p7, %p2658_p5 }
 0x7a4   : > { %2668 = shalt.err (!%p2665_p4)
}
 0x7a5   : > { %2211 = dma.vmem_to_hbm [thread:$0]  (%p3852_p1), %s3620_s7, 128, %s1576_s16, %s1546_s22  }
 0x7a6 PF: > { %s3853_s17 = sld [smem:[#allocation37_spill]]  ;;  %s3854_s15 = sld [smem:[#allocation31_spill]] }
 0x7a7   : > { %s3855_s25 = sld [smem:[#allocation42_spill]] }
 0x7ac   : > { %p2247_p11 = scmp.ge.s32.totalorder %s3853_s17, 2  ;;  %s1590_s6 = sand.u32 1, %s3854_s15  }
 0x7ad   : > { %p3856_p3 = scmp.ne.s32.totalorder %s3855_s25, 0  ;;  %s1591_s11 = scalar_lea.sflag [#allocation5], %s1590_s6 }
 0x7af   : > { %p2240_p6 = pnand %p2247_p11, %p3856_p3 }
 0x7b1   : > { %2750 = dma.done.wait (!%p2240_p6), %s1591_s11, 256  }
 0x7b2   : > { %2752 = vsyncadd (!%p2240_p6), %s1591_s11, 4294967040  ;;  %s3857_s21 = sld [smem:[#allocation28_spill]]  ;;  %s3858_s18 = sld [smem:[#allocation44_spill]] }
 0x7b8   : > { %s1599_s19 = sand.u32 1, %s3857_s21   ;;  %p3859_p8 = scmp.ne.s32.totalorder %s3858_s18, 0 }
 0x7b9   : > { %s1600_s3 = scalar_lea.sflag [#allocation19], %s1599_s19 }
 0x7ba   : > { %p2243_p13 = pnand %p2247_p11, %p3859_p8 }
 0x7bc   : > { %2754 = dma.done.wait (!%p2243_p13), %s1600_s3, 128  }
 0x7bd   : > { %2756 = vsyncadd (!%p2243_p13), %s1600_s3, 4294967168  ;;  %s47_s16 = sadd.s32 1, %s3853_s17   ;;  %s3861_s18 = sld [smem:[#allocation29_spill]] }
 0x7be   : > { %p3651_p1 = scmp.ge.s32.totalorder %s47_s16, 6   ;;  %s3862_s21 = sld [smem:[#allocation30_spill]] }
 0x7bf   : > { %s3863_s7 = sld [smem:[#allocation48_spill]]  ;;  %s3864_s24 = sld [smem:[#allocation32_spill]] }
 0x7c0   : > { %s3865_s9 = sld [smem:[#allocation49_spill]]  ;;  %s3866_s28 = sld [smem:[#allocation35_spill]] }
 0x7c1   : > { %s3867_s29 = sld [smem:[#allocation36_spill]]  ;;  %s3868_s14 = sld [smem:[#allocation46_spill]] }
 0x7c2   : > { %s3869_s30 = sld [smem:[#allocation47_spill]]  ;;  %s3870_s19 = smov %s2767_s20 }
 0x7c3   : > { %s3871_s20 = smov %s3163_s27  ;;  %s3872_s22 = smov %s2779_s23 }
 0x7c4   : > { %s3874_s25 = smov %s2791_s26  ;;  %46 = sbr.rel (!%p3651_p1) target bundleno = 32 (0x20), region = 240 }
 0x7c5   : > { %s3873_s23 = smov %s3863_s7 }
 0x7c6   : > { %s3875_s26 = smov %s3865_s9  ;;  %s3876_s27 = smov %s3866_s28 }
 0x7c7   : > { %s3877_s28 = smov %s3867_s29  ;;  %s3878_s29 = smov %s3868_s14 }
 0x7cb   :  { %1605 = vsyncpa [#allocation4], 1 }
 0x7cc   :  { %1607 = vsyncpa [#allocation4 + $0x1], 1 }
 0x7cd   :  { %1608 = vsyncpa [#allocation7], 1 }
 0x7ce   :  { %1610 = vsyncpa [#allocation7 + $0x1], 1 }
 0x7cf   :  { %1611 = vsyncpa [#allocation10], 1 }
 0x7d0   :  { %1613 = vsyncpa [#allocation10 + $0x1], 1 }
 0x7d1   :  { %1614 = vsyncpa [#allocation13], 1 }
 0x7d2   :  { %1616 = vsyncpa [#allocation13 + $0x1], 1 }
 0x7d3   :  { %1617 = vsyncpa [#allocation16], 1 }
 0x7d4   :  { %1619 = vsyncpa [#allocation16 + $0x1], 1 }
 0x7d5   :  { %1620 = vsyncpa [#allocation5], 1 }
 0x7d6   :  { %1622 = vsyncpa [#allocation5 + $0x1], 1 }
 0x7d7   :  { %1623 = vsyncpa [#allocation19], 1 }
 0x7d8   :  { %1625 = vsyncpa [#allocation19 + $0x1], 1 }

</bundles_post_ra>
